<compile_context>
chip_gen: v7x
topology: tpu7x:2x2x1
jax: 0.10.0
libtpu: 0.0.40
codegen_flags: <defaults>
</compile_context>

<pallas_src>
import numpy as np
import jax
import jax.numpy as jnp
from jax import lax
from jax.experimental import pallas as pl
from jax.experimental.pallas import tpu as pltpu


# ------------------------------- helpers ------------------------------------

def _round_up(x, m):
    return ((x + m - 1) // m) * m


def _layernorm(x, gamma, beta, eps=1e-5):
    mean = jnp.mean(x, axis=-1, keepdims=True)
    var = jnp.mean((x - mean) ** 2, axis=-1, keepdims=True)
    return (x - mean) * lax.rsqrt(var + eps) * gamma + beta


# ----------------------------- Pallas kernel --------------------------------

def _make_stack_kernel(Lp, E, F, H, final_norm, need_weights):
    """One encoder/decoder layer per grid step; x carried in VMEM scratch.

    final_norm=True  -> TransformerEncoderLayer (norm1 after attn, norm2 after
                        FFN residual).
    final_norm=False -> TransformerDecoderLayer (norm3 after attn, no norm
                        after FFN residual).
    """
    Dh = E // H

    def kernel(x_ref, pos_ref, mask_ref,
               wqk_ref, bqk_ref, wv_ref, bv_ref, wo_ref, bo_ref,
               w1_ref, b1_ref, w2_ref, b2_ref,
               ga_ref, ba_ref, gb_ref, bb_ref,
               *out_and_scratch):
        if need_weights:
            out_ref, attn_ref, x_sc = out_and_scratch
        else:
            out_ref, x_sc = out_and_scratch

        li = pl.program_id(1)

        @pl.when(li == 0)
        def _():                                  # load residual stream once per batch block
            x_sc[...] = x_ref[0].astype(jnp.float32)

        x = x_sc[...]                             # (Lp, E) f32 residual stream
        pos = pos_ref[0].astype(jnp.float32)      # (Lp, E)
        neg = mask_ref[0].astype(jnp.float32) * (-1e9)   # (1, Lp); broadcasts in the add

        wqk = wqk_ref[0]                          # (E, 2E) bf16 (Q half pre-scaled)
        bqk = bqk_ref[0]                          # (1, 2E) f32
        wv, bv = wv_ref[0], bv_ref[0]
        wo, bo = wo_ref[0], bo_ref[0]
        w1, b1 = w1_ref[0], b1_ref[0]
        w2, b2 = w2_ref[0], b2_ref[0]
        ga, ba = ga_ref[0], ba_ref[0]
        gb, bb = gb_ref[0], bb_ref[0]

        # ---------------- multi-head attention ----------------
        qk_in = (x + pos).astype(jnp.bfloat16)    # query/key get the pos embed
        qk = jnp.dot(qk_in, wqk, preferred_element_type=jnp.float32) + bqk   # (Lp, 2E)
        v = jnp.dot(x.astype(jnp.bfloat16), wv,
                    preferred_element_type=jnp.float32) + bv                 # (Lp, E)
        q, k = qk[:, :E], qk[:, E:]

        # head-major (H, Lp, Dh) stacks -> leading-batch-dim MXU dots
        qh = jnp.stack([q[:, h * Dh:(h + 1) * Dh] for h in range(H)], 0).astype(jnp.bfloat16)
        kh = jnp.stack([k[:, h * Dh:(h + 1) * Dh] for h in range(H)], 0).astype(jnp.bfloat16)
        vh = jnp.stack([v[:, h * Dh:(h + 1) * Dh] for h in range(H)], 0).astype(jnp.bfloat16)

        s = lax.dot_general(qh, kh, (((2,), (2,)), ((0,), (0,))),
                            preferred_element_type=jnp.float32)              # (H, Lp, Lp) f32
        s = s + neg                                                           # key-padding mask
        s = s - jnp.max(s, axis=-1, keepdims=True)
        p = jnp.exp(s)
        p = p * pl.reciprocal(jnp.sum(p, axis=-1, keepdims=True), approx=True)

        if need_weights:
            # head-averaged attention weights, matching nn.MultiheadAttention
            attn_ref[0, 0] = jnp.mean(p, axis=0).astype(attn_ref.dtype)

        ctx = lax.dot_general(p.astype(jnp.bfloat16), vh,
                              (((2,), (1,)), ((0,), (0,))),
                              preferred_element_type=jnp.float32)             # (H, Lp, Dh)
        ctx_full = jnp.concatenate([ctx[h] for h in range(H)], axis=-1)       # (Lp, E)
        attn_out = jnp.dot(ctx_full.astype(jnp.bfloat16), wo,
                           preferred_element_type=jnp.float32) + bo           # single K=E proj

        # ---------------- residual + FFN ----------------
        y = _layernorm(x + attn_out, ga, ba)
        hf = jnp.maximum(jnp.dot(y.astype(jnp.bfloat16), w1,
                                 preferred_element_type=jnp.float32) + b1, 0.0)
        z = y + jnp.dot(hf.astype(jnp.bfloat16), w2,
                        preferred_element_type=jnp.float32) + b2
        if final_norm:
            z = _layernorm(z, gb, bb)

        x_sc[...] = z
        out_ref[0] = z.astype(out_ref.dtype)

    return kernel


def _make_stack_fn(B, Lp, E, F, H, num_layers, final_norm, need_weights=True):
    kernel = _make_stack_kernel(Lp, E, F, H, final_norm, need_weights)

    def data_spec(shape):          # indexed by the batch grid axis
        nd = len(shape)
        return pl.BlockSpec((1,) + tuple(shape[1:]),
                            lambda bi, li: (bi,) + (0,) * (nd - 1))

    def layer_spec(shape):         # indexed by the layer grid axis
        nd = len(shape)
        return pl.BlockSpec((1,) + tuple(shape[1:]),
                            lambda bi, li: (li,) + (0,) * (nd - 1))

    in_specs = [
        data_spec((B, Lp, E)),                   # x
        data_spec((B, Lp, E)),                   # positional embedding
        data_spec((B, 1, Lp)),                   # key-padding mask (1.0 = pad)
        layer_spec((num_layers, E, 2 * E)),      # wqk (bf16, Q pre-scaled)
        layer_spec((num_layers, 1, 2 * E)),      # bqk
        layer_spec((num_layers, E, E)),          # wv
        layer_spec((num_layers, 1, E)),          # bv
        layer_spec((num_layers, E, E)),          # wo
        layer_spec((num_layers, 1, E)),          # bo
        layer_spec((num_layers, E, F)),          # w1
        layer_spec((num_layers, 1, F)),          # b1
        layer_spec((num_layers, F, E)),          # w2
        layer_spec((num_layers, 1, E)),          # b2
        layer_spec((num_layers, 1, E)),          # norm-A gamma
        layer_spec((num_layers, 1, E)),          # norm-A beta
        layer_spec((num_layers, 1, E)),          # norm-B gamma
        layer_spec((num_layers, 1, E)),          # norm-B beta
    ]
    out_specs = [pl.BlockSpec((1, Lp, E), lambda bi, li: (bi, 0, 0))]
    out_shape = [jax.ShapeDtypeStruct((B, Lp, E), jnp.float32)]
    if need_weights:
        out_specs.append(pl.BlockSpec((1, 1, Lp, Lp), lambda bi, li: (li, bi, 0, 0)))
        out_shape.append(jax.ShapeDtypeStruct((num_layers, B, Lp, Lp), jnp.float32))

    # rough per-step VMEM footprint -> explicit scoped-VMEM limit (v5e safety)
    f32b, bf16b = 4, 2
    blocks = f32b * (3 * Lp * E + Lp + Lp * Lp)
    weights = bf16b * (2 * E * E + 2 * E * E + 2 * E * F) + f32b * (10 * E + F)
    temps = f32b * (2 * Lp * E + 6 * Lp * E + 3 * H * Lp * Lp + 2 * Lp * F)
    est = 2 * (blocks + weights) + f32b * Lp * E + temps
    vmem_limit = int(min(48 * 2 ** 20, max(32 * 2 ** 20, 4 * est)))

    return pl.pallas_call(
        kernel,
        grid=(B, num_layers),
        in_specs=in_specs,
        out_specs=out_specs,
        out_shape=out_shape,
        scratch_shapes=[pltpu.VMEM((Lp, E), jnp.float32)],
        compiler_params=pltpu.CompilerParams(
            dimension_semantics=("parallel", "arbitrary"),
            vmem_limit_bytes=vmem_limit),
    )


def _apply_stack(stack_fn, x_ble, pos_ble, mask_b1l, p):
    return stack_fn(
        x_ble, pos_ble, mask_b1l,
        p['wqk'], p['bqk'], p['wv'], p['bv'], p['wo'], p['bo'],
        p['w1'], p['b1'], p['w2'], p['b2'],
        p['ga'], p['ba'], p['gb'], p['bb'])


# ------------------------------- parameters ---------------------------------

def init_stack_params(key, embed_dim, dim_ff, nhead, num_layers):
    """Per-layer (stacked) params, prepared for the kernel:
       * QK projections fused into one (E, 2E) weight, Q half pre-scaled
       * matmul weights cast to bf16, biases / norm params kept f32."""
    E, F, H = embed_dim, dim_ff, nhead
    scale = 1.0 / float(E // H) ** 0.5
    layer_keys = jax.random.split(key, num_layers)

    def one(k):
        ks = jax.random.split(k, 8)

        def w(kk, shape, s=0.05):
            return (s * jax.random.normal(kk, shape)).astype(jnp.float32)

        wqkv_t = w(ks[0], (E, 3 * E))                       # in_proj_weight.T
        bqkv = w(ks[1], (1, 3 * E))
        return dict(
            wqk=jnp.concatenate([wqkv_t[:, :E] * scale,     # 1/sqrt(Dh) folded into Q
                                 wqkv_t[:, E:2 * E]], axis=1).astype(jnp.bfloat16),
            bqk=jnp.concatenate([bqkv[:, :E] * scale, bqkv[:, E:2 * E]], axis=1),
            wv=wqkv_t[:, 2 * E:].astype(jnp.bfloat16), bv=bqkv[:, 2 * E:],
            wo=w(ks[2], (E, E)).astype(jnp.bfloat16), bo=w(ks[3], (1, E)),
            w1=w(ks[4], (E, F)).astype(jnp.bfloat16), b1=w(ks[5], (1, F)),
            w2=w(ks[6], (F, E)).astype(jnp.bfloat16), b2=w(ks[7], (1, E)),
            ga=jnp.ones((1, E), jnp.float32), ba=jnp.zeros((1, E), jnp.float32),
            gb=jnp.ones((1, E), jnp.float32), bb=jnp.zeros((1, E), jnp.float32),
        )

    per_layer = [one(k) for k in layer_keys]
    return {n: jnp.stack([p[n] for p in per_layer], axis=0) for n in per_layer[0]}


# --------------------------- transformer forward ----------------------------

def transformer_forward(features, im_idx, params, enc_layers, dec_layers,
                        nhead, mode='latter', need_weights=True):
    feats = jnp.asarray(features, jnp.float32)
    # im_idx determines all shapes -> inspected on host (cheap, once). im_idx
    # is assumed sorted (as in the STTran pipeline / the reference module).
    idx_np = np.asarray(jax.device_get(im_idx)).astype(np.int64)
    N, E = feats.shape
    F = int(params['enc']['w1'].shape[2])

    _, counts = np.unique(idx_np, return_counts=True)
    l = int(counts.max())                      # count of mode(im_idx)
    b = int(idx_np[-1] + 1)
    Lp = _round_up(l, 8)                       # sublane-aligned sequence length

    # ---- host-side index bookkeeping (indices only; data stays on device) --
    enc_idx = np.zeros((b, Lp), np.int32)
    enc_valid = np.zeros((b, Lp), bool)
    for i in range(b):
        rows = np.where(idx_np == i)[0]
        enc_idx[i, :len(rows)] = rows
        enc_valid[i, :len(rows)] = True

    enc_valid_j = jnp.asarray(enc_valid)
    rel_ble = jnp.where(enc_valid_j[..., None],
                        feats[jnp.asarray(enc_idx)], 0.0)             # (b, Lp, E)
    enc_mask_b1l = (1.0 - enc_valid_j.astype(jnp.float32)).reshape(b, 1, Lp)
    pos_zero = jnp.zeros((b, Lp, E), jnp.float32)

    # ---- local (spatial) encoder: single fused Pallas call ----
    if enc_layers > 0:
        enc_fn = _make_stack_fn(b, Lp, E, F, nhead, enc_layers,
                                final_norm=True, need_weights=need_weights)
        enc_out = _apply_stack(enc_fn, rel_ble, pos_zero, enc_mask_b1l,
                               params['enc'])
        local_out_ble = enc_out[0]
        local_w = enc_out[1][:, :, :l, :l] if need_weights else None
    else:
        local_out_ble, local_w = rel_ble, None

    # ---- temporal-decoder input bookkeeping (host indices, device gather) --
    L2, Bd = 2 * l, b - 1
    L2p = _round_up(L2, 8)
    valid_pairs = np.argwhere(enc_valid)       # feature row r -> (frame, slot)
    dec_b = np.zeros((Bd, L2p), np.int32)
    dec_l = np.zeros((Bd, L2p), np.int32)
    dec_valid = np.zeros((Bd, L2p), bool)
    pos_sel = np.zeros((Bd, L2p), np.int32)
    pos_valid = np.zeros((Bd, L2p), bool)
    idx_cols = -np.ones((L2, Bd), np.int64)    # mirrors `idx` in the module
    for j in range(Bd):
        rows = np.where((idx_np == j) | (idx_np == j + 1))[0]
        c = len(rows)
        dec_b[j, :c] = valid_pairs[rows, 0]
        dec_l[j, :c] = valid_pairs[rows, 1]
        dec_valid[j, :c] = True
        idx_cols[:c, j] = idx_np[rows]
        cj = int(np.sum(idx_np == j))
        cj1 = int(np.sum(idx_np == j + 1))
        pos_sel[j, cj:cj + cj1] = 1
        pos_valid[j, :cj + cj1] = True

    dec_valid_j = jnp.asarray(dec_valid)
    global_in = jnp.where(
        dec_valid_j[..., None],
        local_out_ble[jnp.asarray(dec_b), jnp.asarray(dec_l)], 0.0)   # (Bd, L2p, E)
    position_embed = jnp.where(jnp.asarray(pos_valid)[..., None],
                               params['pos_emb'][jnp.asarray(pos_sel)], 0.0)
    # padding mask from the host-side validity table (not from feature sums)
    gmask_b1l = (1.0 - dec_valid_j.astype(jnp.float32)).reshape(Bd, 1, L2p)

    # ---- global (temporal) decoder: single fused Pallas call ----
    if dec_layers > 0:
        dec_fn = _make_stack_fn(Bd, L2p, E, F, nhead, dec_layers,
                                final_norm=False, need_weights=need_weights)
        dec_out = _apply_stack(dec_fn, global_in, position_embed, gmask_b1l,
                               params['dec'])
        global_out_ble = dec_out[0]
        global_w = dec_out[1][:, :, :L2, :L2] if need_weights else None
    else:
        global_out_ble, global_w = global_in, None

    # ---- scatter decoder outputs back to per-feature rows (device gather) --
    src1_j = np.zeros(N, np.int32); src1_t = np.zeros(N, np.int32)
    src2_j = np.zeros(N, np.int32); src2_t = np.zeros(N, np.int32)
    w1v = np.zeros(N, np.float32); w2v = np.zeros(N, np.float32)
    if mode == 'both':
        for j in range(Bd):
            if j == 0:
                tgt = np.where(idx_np == 0)[0]
                r = np.where(idx_cols[:, 0] == 0)[0]
                src1_j[tgt] = 0; src1_t[tgt] = r; w1v[tgt] = 1.0; w2v[tgt] = 0.0
            if j == Bd - 1:
                tgt = np.where(idx_np == j + 1)[0]
                r = np.where(idx_cols[:, j] == j + 1)[0]
                src1_j[tgt] = j; src1_t[tgt] = r; w1v[tgt] = 1.0; w2v[tgt] = 0.0
            else:
                tgt = np.where(idx_np == j + 1)[0]
                r1 = np.where(idx_cols[:, j] == j + 1)[0]
                r2 = np.where(idx_cols[:, j + 1] == j + 1)[0]
                src1_j[tgt] = j; src1_t[tgt] = r1; w1v[tgt] = 0.5
                src2_j[tgt] = j + 1; src2_t[tgt] = r2; w2v[tgt] = 0.5
    elif mode == 'latter':
        for j in range(Bd):
            if j == 0:
                tgt = np.where(idx_np == 0)[0]
                r = np.where(idx_cols[:, 0] == 0)[0]
                src1_j[tgt] = 0; src1_t[tgt] = r; w1v[tgt] = 1.0
            tgt = np.where(idx_np == j + 1)[0]
            r = np.where(idx_cols[:, j] == j + 1)[0]
            src1_j[tgt] = j; src1_t[tgt] = r; w1v[tgt] = 1.0

    if mode in ('both', 'latter'):
        g1 = global_out_ble[jnp.asarray(src1_j), jnp.asarray(src1_t)]
        g2 = global_out_ble[jnp.asarray(src2_j), jnp.asarray(src2_t)]
        output = (jnp.asarray(w1v)[:, None] * g1
                  + jnp.asarray(w2v)[:, None] * g2).astype(feats.dtype)
    else:  # mode=None: output stays zeros, matching the PyTorch module
        output = jnp.zeros_like(feats)

    return output, global_w, local_w


# ----------------------------------- main ------------------------------------

if __name__ == "__main__":
    EMBED_DIM, NHEAD, DIM_FF = 64, 8, 128
    ENC_LAYERS, DEC_LAYERS = 1, 3

    key = jax.random.PRNGKey(0)
    kf, kp_enc, kp_dec, kpe = jax.random.split(key, 4)

    # small example: 10 detections across 3 frames (im_idx sorted, as upstream)
    im_idx = jnp.array([0, 0, 0, 0, 1, 1, 1, 2, 2, 2], dtype=jnp.int32)
    features = jax.random.normal(kf, (int(im_idx.shape[0]), EMBED_DIM),
                                 jnp.float32)

    params = dict(
        enc=init_stack_params(kp_enc, EMBED_DIM, DIM_FF, NHEAD, ENC_LAYERS),
        dec=init_stack_params(kp_dec, EMBED_DIM, DIM_FF, NHEAD, DEC_LAYERS),
        pos_emb=jax.random.uniform(kpe, (2, EMBED_DIM), dtype=jnp.float32),
    )

    out, global_w, local_w = transformer_forward(
        features, im_idx, params, ENC_LAYERS, DEC_LAYERS, NHEAD, mode='latter')
    jax.block_until_ready((out, global_w, local_w))

    assert out.shape == features.shape
    assert local_w.shape == (ENC_LAYERS, 3, 4, 4)
    assert global_w.shape == (DEC_LAYERS, 2, 8, 8)
    assert bool(jnp.all(jnp.isfinite(out)))
    print("KERNEL_OK")
</pallas_src>

<mosaic_0001>
module attributes {stable_mosaic.version = 11 : i64} {
  func.func @kernel(%arg0: i32, %arg1: i32, %arg2: memref<1x8x64xf32, #tpu.memory_space<vmem>>, %arg3: memref<1x8x64xf32, #tpu.memory_space<vmem>>, %arg4: memref<1x1x8xf32, #tpu.memory_space<vmem>>, %arg5: memref<1x64x128xbf16, #tpu.memory_space<vmem>>, %arg6: memref<1x1x128xf32, #tpu.memory_space<vmem>>, %arg7: memref<1x64x64xbf16, #tpu.memory_space<vmem>>, %arg8: memref<1x1x64xf32, #tpu.memory_space<vmem>>, %arg9: memref<1x64x64xbf16, #tpu.memory_space<vmem>>, %arg10: memref<1x1x64xf32, #tpu.memory_space<vmem>>, %arg11: memref<1x64x128xbf16, #tpu.memory_space<vmem>>, %arg12: memref<1x1x128xf32, #tpu.memory_space<vmem>>, %arg13: memref<1x128x64xbf16, #tpu.memory_space<vmem>>, %arg14: memref<1x1x64xf32, #tpu.memory_space<vmem>>, %arg15: memref<1x1x64xf32, #tpu.memory_space<vmem>>, %arg16: memref<1x1x64xf32, #tpu.memory_space<vmem>>, %arg17: memref<1x1x64xf32, #tpu.memory_space<vmem>>, %arg18: memref<1x1x64xf32, #tpu.memory_space<vmem>>, %arg19: memref<1x8x64xf32, #tpu.memory_space<vmem>>, %arg20: memref<1x1x8x8xf32, #tpu.memory_space<vmem>>, %arg21: memref<8x64xf32, #tpu.memory_space<vmem>>) attributes {dimension_semantics = [#tpu.dimension_semantics<parallel>, #tpu.dimension_semantics<arbitrary>], iteration_bounds = array<i64: 3, 1>, scalar_prefetch = 0 : i64, scratch_operands = 1 : i64, tpu.core_type = #tpu.core_type<tc>, window_params = [{transform_indices = @transform_0, window_bounds = array<i64: 1, 8, 64>}, {transform_indices = @transform_1, window_bounds = array<i64: 1, 8, 64>}, {transform_indices = @transform_2, window_bounds = array<i64: 1, 1, 8>}, {transform_indices = @transform_3, window_bounds = array<i64: 1, 64, 128>}, {transform_indices = @transform_4, window_bounds = array<i64: 1, 1, 128>}, {transform_indices = @transform_5, window_bounds = array<i64: 1, 64, 64>}, {transform_indices = @transform_6, window_bounds = array<i64: 1, 1, 64>}, {transform_indices = @transform_7, window_bounds = array<i64: 1, 64, 64>}, {transform_indices = @transform_8, window_bounds = array<i64: 1, 1, 64>}, {transform_indices = @transform_9, window_bounds = array<i64: 1, 64, 128>}, {transform_indices = @transform_10, window_bounds = array<i64: 1, 1, 128>}, {transform_indices = @transform_11, window_bounds = array<i64: 1, 128, 64>}, {transform_indices = @transform_12, window_bounds = array<i64: 1, 1, 64>}, {transform_indices = @transform_13, window_bounds = array<i64: 1, 1, 64>}, {transform_indices = @transform_14, window_bounds = array<i64: 1, 1, 64>}, {transform_indices = @transform_15, window_bounds = array<i64: 1, 1, 64>}, {transform_indices = @transform_16, window_bounds = array<i64: 1, 1, 64>}, {transform_indices = @transform_17, window_bounds = array<i64: 1, 8, 64>}, {transform_indices = @transform_18, window_bounds = array<i64: 1, 1, 8, 8>}]} {
    %c0_i32 = arith.constant 0 : i32
    %0 = arith.cmpi eq, %arg1, %c0_i32 : i32
    %1 = arith.extui %0 : i1 to i32
    %c0_i32_0 = arith.constant 0 : i32
    %2 = arith.cmpi ne, %1, %c0_i32_0 : i32
    scf.if %2 {
      %c0_81 = arith.constant 0 : index
      %c0_82 = arith.constant 0 : index
      %c0_83 = arith.constant 0 : index
      %206 = vector.load %arg2[%c0_81, %c0_82, %c0_83] : memref<1x8x64xf32, #tpu.memory_space<vmem>>, vector<1x8x64xf32>
      %207 = vector.shape_cast %206 : vector<1x8x64xf32> to vector<8x64xf32>
      %c0_84 = arith.constant 0 : index
      %c0_85 = arith.constant 0 : index
      %208 = vector.load %arg21[%c0_84, %c0_85] : memref<8x64xf32, #tpu.memory_space<vmem>>, vector<8x64xf32>
      tpu.vector_store %arg21[%c0_84, %c0_85], %207 {strides = array<i32>} : memref<8x64xf32, #tpu.memory_space<vmem>>, vector<8x64xf32>,
    } else {
    }
    %c0 = arith.constant 0 : index
    %c0_1 = arith.constant 0 : index
    %3 = vector.load %arg21[%c0, %c0_1] : memref<8x64xf32, #tpu.memory_space<vmem>>, vector<8x64xf32>
    %c0_2 = arith.constant 0 : index
    %c0_3 = arith.constant 0 : index
    %c0_4 = arith.constant 0 : index
    %4 = vector.load %arg3[%c0_2, %c0_3, %c0_4] : memref<1x8x64xf32, #tpu.memory_space<vmem>>, vector<1x8x64xf32>
    %5 = vector.shape_cast %4 : vector<1x8x64xf32> to vector<8x64xf32>
    %c0_5 = arith.constant 0 : index
    %c0_6 = arith.constant 0 : index
    %c0_7 = arith.constant 0 : index
    %6 = vector.load %arg4[%c0_5, %c0_6, %c0_7] : memref<1x1x8xf32, #tpu.memory_space<vmem>>, vector<1x1x8xf32>
    %7 = vector.shape_cast %6 : vector<1x1x8xf32> to vector<1x8xf32>
    %cst = arith.constant -1.000000e+09 : f32
    %8 = vector.broadcast %cst : f32 to vector<1x8xf32>
    %9 = arith.mulf %7, %8 : vector<1x8xf32>
    %c0_8 = arith.constant 0 : index
    %c0_9 = arith.constant 0 : index
    %c0_10 = arith.constant 0 : index
    %10 = vector.load %arg5[%c0_8, %c0_9, %c0_10] : memref<1x64x128xbf16, #tpu.memory_space<vmem>>, vector<1x64x128xbf16>
    %11 = vector.shape_cast %10 : vector<1x64x128xbf16> to vector<64x128xbf16>
    %c0_11 = arith.constant 0 : index
    %c0_12 = arith.constant 0 : index
    %c0_13 = arith.constant 0 : index
    %12 = vector.load %arg6[%c0_11, %c0_12, %c0_13] : memref<1x1x128xf32, #tpu.memory_space<vmem>>, vector<1x1x128xf32>
    %13 = vector.shape_cast %12 : vector<1x1x128xf32> to vector<1x128xf32>
    %c0_14 = arith.constant 0 : index
    %c0_15 = arith.constant 0 : index
    %c0_16 = arith.constant 0 : index
    %14 = vector.load %arg7[%c0_14, %c0_15, %c0_16] : memref<1x64x64xbf16, #tpu.memory_space<vmem>>, vector<1x64x64xbf16>
    %15 = vector.shape_cast %14 : vector<1x64x64xbf16> to vector<64x64xbf16>
    %c0_17 = arith.constant 0 : index
    %c0_18 = arith.constant 0 : index
    %c0_19 = arith.constant 0 : index
    %16 = vector.load %arg8[%c0_17, %c0_18, %c0_19] : memref<1x1x64xf32, #tpu.memory_space<vmem>>, vector<1x1x64xf32>
    %17 = vector.shape_cast %16 : vector<1x1x64xf32> to vector<1x64xf32>
    %c0_20 = arith.constant 0 : index
    %c0_21 = arith.constant 0 : index
    %c0_22 = arith.constant 0 : index
    %18 = vector.load %arg9[%c0_20, %c0_21, %c0_22] : memref<1x64x64xbf16, #tpu.memory_space<vmem>>, vector<1x64x64xbf16>
    %19 = vector.shape_cast %18 : vector<1x64x64xbf16> to vector<64x64xbf16>
    %c0_23 = arith.constant 0 : index
    %c0_24 = arith.constant 0 : index
    %c0_25 = arith.constant 0 : index
    %20 = vector.load %arg10[%c0_23, %c0_24, %c0_25] : memref<1x1x64xf32, #tpu.memory_space<vmem>>, vector<1x1x64xf32>
    %21 = vector.shape_cast %20 : vector<1x1x64xf32> to vector<1x64xf32>
    %c0_26 = arith.constant 0 : index
    %c0_27 = arith.constant 0 : index
    %c0_28 = arith.constant 0 : index
    %22 = vector.load %arg11[%c0_26, %c0_27, %c0_28] : memref<1x64x128xbf16, #tpu.memory_space<vmem>>, vector<1x64x128xbf16>
    %23 = vector.shape_cast %22 : vector<1x64x128xbf16> to vector<64x128xbf16>
    %c0_29 = arith.constant 0 : index
    %c0_30 = arith.constant 0 : index
    %c0_31 = arith.constant 0 : index
    %24 = vector.load %arg12[%c0_29, %c0_30, %c0_31] : memref<1x1x128xf32, #tpu.memory_space<vmem>>, vector<1x1x128xf32>
    %25 = vector.shape_cast %24 : vector<1x1x128xf32> to vector<1x128xf32>
    %c0_32 = arith.constant 0 : index
    %c0_33 = arith.constant 0 : index
    %c0_34 = arith.constant 0 : index
    %26 = vector.load %arg13[%c0_32, %c0_33, %c0_34] : memref<1x128x64xbf16, #tpu.memory_space<vmem>>, vector<1x128x64xbf16>
    %27 = vector.shape_cast %26 : vector<1x128x64xbf16> to vector<128x64xbf16>
    %c0_35 = arith.constant 0 : index
    %c0_36 = arith.constant 0 : index
    %c0_37 = arith.constant 0 : index
    %28 = vector.load %arg14[%c0_35, %c0_36, %c0_37] : memref<1x1x64xf32, #tpu.memory_space<vmem>>, vector<1x1x64xf32>
    %29 = vector.shape_cast %28 : vector<1x1x64xf32> to vector<1x64xf32>
    %c0_38 = arith.constant 0 : index
    %c0_39 = arith.constant 0 : index
    %c0_40 = arith.constant 0 : index
    %30 = vector.load %arg15[%c0_38, %c0_39, %c0_40] : memref<1x1x64xf32, #tpu.memory_space<vmem>>, vector<1x1x64xf32>
    %31 = vector.shape_cast %30 : vector<1x1x64xf32> to vector<1x64xf32>
    %c0_41 = arith.constant 0 : index
    %c0_42 = arith.constant 0 : index
    %c0_43 = arith.constant 0 : index
    %32 = vector.load %arg16[%c0_41, %c0_42, %c0_43] : memref<1x1x64xf32, #tpu.memory_space<vmem>>, vector<1x1x64xf32>
    %33 = vector.shape_cast %32 : vector<1x1x64xf32> to vector<1x64xf32>
    %c0_44 = arith.constant 0 : index
    %c0_45 = arith.constant 0 : index
    %c0_46 = arith.constant 0 : index
    %34 = vector.load %arg17[%c0_44, %c0_45, %c0_46] : memref<1x1x64xf32, #tpu.memory_space<vmem>>, vector<1x1x64xf32>
    %35 = vector.shape_cast %34 : vector<1x1x64xf32> to vector<1x64xf32>
    %c0_47 = arith.constant 0 : index
    %c0_48 = arith.constant 0 : index
    %c0_49 = arith.constant 0 : index
    %36 = vector.load %arg18[%c0_47, %c0_48, %c0_49] : memref<1x1x64xf32, #tpu.memory_space<vmem>>, vector<1x1x64xf32>
    %37 = vector.shape_cast %36 : vector<1x1x64xf32> to vector<1x64xf32>
    %38 = arith.addf %3, %5 : vector<8x64xf32>
    %39 = arith.truncf %38 : vector<8x64xf32> to vector<8x64xbf16>
    %cst_50 = arith.constant dense<0.000000e+00> : vector<8x128xf32>
    %40 = tpu.matmul %39, %11, %cst_50 {dimension_numbers = #tpu.dot_dimension_numbers<[1], [0], [0], [1], [0, 0, 1, 1], [], []>} : vector<8x64xbf16>, vector<64x128xbf16>, vector<8x128xf32> -> vector<8x128xf32>
    %41 = vector.broadcast %13 : vector<1x128xf32> to vector<8x128xf32>
    %42 = arith.addf %40, %41 : vector<8x128xf32>
    %43 = arith.truncf %3 : vector<8x64xf32> to vector<8x64xbf16>
    %cst_51 = arith.constant dense<0.000000e+00> : vector<8x64xf32>
    %44 = tpu.matmul %43, %15, %cst_51 {dimension_numbers = #tpu.dot_dimension_numbers<[1], [0], [0], [1], [0, 0, 1, 1], [], []>} : vector<8x64xbf16>, vector<64x64xbf16>, vector<8x64xf32> -> vector<8x64xf32>
    %45 = vector.broadcast %17 : vector<1x64xf32> to vector<8x64xf32>
    %46 = arith.addf %44, %45 : vector<8x64xf32>
    %47 = vector.extract_strided_slice %42 {offsets = [0, 0], sizes = [8, 64], strides = [1, 1]} : vector<8x128xf32> to vector<8x64xf32>
    %48 = vector.extract_strided_slice %42 {offsets = [0, 64], sizes = [8, 64], strides = [1, 1]} : vector<8x128xf32> to vector<8x64xf32>
    %49 = vector.extract_strided_slice %47 {offsets = [0, 0], sizes = [8, 8], strides = [1, 1]} : vector<8x64xf32> to vector<8x8xf32>
    %50 = vector.extract_strided_slice %47 {offsets = [0, 8], sizes = [8, 8], strides = [1, 1]} : vector<8x64xf32> to vector<8x8xf32>
    %51 = vector.extract_strided_slice %47 {offsets = [0, 16], sizes = [8, 8], strides = [1, 1]} : vector<8x64xf32> to vector<8x8xf32>
    %52 = vector.extract_strided_slice %47 {offsets = [0, 24], sizes = [8, 8], strides = [1, 1]} : vector<8x64xf32> to vector<8x8xf32>
    %53 = vector.extract_strided_slice %47 {offsets = [0, 32], sizes = [8, 8], strides = [1, 1]} : vector<8x64xf32> to vector<8x8xf32>
    %54 = vector.extract_strided_slice %47 {offsets = [0, 40], sizes = [8, 8], strides = [1, 1]} : vector<8x64xf32> to vector<8x8xf32>
    %55 = vector.extract_strided_slice %47 {offsets = [0, 48], sizes = [8, 8], strides = [1, 1]} : vector<8x64xf32> to vector<8x8xf32>
    %56 = vector.extract_strided_slice %47 {offsets = [0, 56], sizes = [8, 8], strides = [1, 1]} : vector<8x64xf32> to vector<8x8xf32>
    %57 = vector.shape_cast %49 : vector<8x8xf32> to vector<1x8x8xf32>
    %58 = vector.shape_cast %50 : vector<8x8xf32> to vector<1x8x8xf32>
    %59 = vector.shape_cast %51 : vector<8x8xf32> to vector<1x8x8xf32>
    %60 = vector.shape_cast %52 : vector<8x8xf32> to vector<1x8x8xf32>
    %61 = vector.shape_cast %53 : vector<8x8xf32> to vector<1x8x8xf32>
    %62 = vector.shape_cast %54 : vector<8x8xf32> to vector<1x8x8xf32>
    %63 = vector.shape_cast %55 : vector<8x8xf32> to vector<1x8x8xf32>
    %64 = vector.shape_cast %56 : vector<8x8xf32> to vector<1x8x8xf32>
    %65 = tpu.concatenate %57, %58, %59, %60, %61, %62, %63, %64 in 0 : vector<1x8x8xf32>, vector<1x8x8xf32>, vector<1x8x8xf32>, vector<1x8x8xf32>, vector<1x8x8xf32>, vector<1x8x8xf32>, vector<1x8x8xf32>, vector<1x8x8xf32> -> vector<8x8x8xf32>
    %66 = arith.truncf %65 : vector<8x8x8xf32> to vector<8x8x8xbf16>
    %67 = vector.extract_strided_slice %48 {offsets = [0, 0], sizes = [8, 8], strides = [1, 1]} : vector<8x64xf32> to vector<8x8xf32>
    %68 = vector.extract_strided_slice %48 {offsets = [0, 8], sizes = [8, 8], strides = [1, 1]} : vector<8x64xf32> to vector<8x8xf32>
    %69 = vector.extract_strided_slice %48 {offsets = [0, 16], sizes = [8, 8], strides = [1, 1]} : vector<8x64xf32> to vector<8x8xf32>
    %70 = vector.extract_strided_slice %48 {offsets = [0, 24], sizes = [8, 8], strides = [1, 1]} : vector<8x64xf32> to vector<8x8xf32>
    %71 = vector.extract_strided_slice %48 {offsets = [0, 32], sizes = [8, 8], strides = [1, 1]} : vector<8x64xf32> to vector<8x8xf32>
    %72 = vector.extract_strided_slice %48 {offsets = [0, 40], sizes = [8, 8], strides = [1, 1]} : vector<8x64xf32> to vector<8x8xf32>
    %73 = vector.extract_strided_slice %48 {offsets = [0, 48], sizes = [8, 8], strides = [1, 1]} : vector<8x64xf32> to vector<8x8xf32>
    %74 = vector.extract_strided_slice %48 {offsets = [0, 56], sizes = [8, 8], strides = [1, 1]} : vector<8x64xf32> to vector<8x8xf32>
    %75 = vector.shape_cast %67 : vector<8x8xf32> to vector<1x8x8xf32>
    %76 = vector.shape_cast %68 : vector<8x8xf32> to vector<1x8x8xf32>
    %77 = vector.shape_cast %69 : vector<8x8xf32> to vector<1x8x8xf32>
    %78 = vector.shape_cast %70 : vector<8x8xf32> to vector<1x8x8xf32>
    %79 = vector.shape_cast %71 : vector<8x8xf32> to vector<1x8x8xf32>
    %80 = vector.shape_cast %72 : vector<8x8xf32> to vector<1x8x8xf32>
    %81 = vector.shape_cast %73 : vector<8x8xf32> to vector<1x8x8xf32>
    %82 = vector.shape_cast %74 : vector<8x8xf32> to vector<1x8x8xf32>
    %83 = tpu.concatenate %75, %76, %77, %78, %79, %80, %81, %82 in 0 : vector<1x8x8xf32>, vector<1x8x8xf32>, vector<1x8x8xf32>, vector<1x8x8xf32>, vector<1x8x8xf32>, vector<1x8x8xf32>, vector<1x8x8xf32>, vector<1x8x8xf32> -> vector<8x8x8xf32>
    %84 = arith.truncf %83 : vector<8x8x8xf32> to vector<8x8x8xbf16>
    %85 = vector.extract_strided_slice %46 {offsets = [0, 0], sizes = [8, 8], strides = [1, 1]} : vector<8x64xf32> to vector<8x8xf32>
    %86 = vector.extract_strided_slice %46 {offsets = [0, 8], sizes = [8, 8], strides = [1, 1]} : vector<8x64xf32> to vector<8x8xf32>
    %87 = vector.extract_strided_slice %46 {offsets = [0, 16], sizes = [8, 8], strides = [1, 1]} : vector<8x64xf32> to vector<8x8xf32>
    %88 = vector.extract_strided_slice %46 {offsets = [0, 24], sizes = [8, 8], strides = [1, 1]} : vector<8x64xf32> to vector<8x8xf32>
    %89 = vector.extract_strided_slice %46 {offsets = [0, 32], sizes = [8, 8], strides = [1, 1]} : vector<8x64xf32> to vector<8x8xf32>
    %90 = vector.extract_strided_slice %46 {offsets = [0, 40], sizes = [8, 8], strides = [1, 1]} : vector<8x64xf32> to vector<8x8xf32>
    %91 = vector.extract_strided_slice %46 {offsets = [0, 48], sizes = [8, 8], strides = [1, 1]} : vector<8x64xf32> to vector<8x8xf32>
    %92 = vector.extract_strided_slice %46 {offsets = [0, 56], sizes = [8, 8], strides = [1, 1]} : vector<8x64xf32> to vector<8x8xf32>
    %93 = vector.shape_cast %85 : vector<8x8xf32> to vector<1x8x8xf32>
    %94 = vector.shape_cast %86 : vector<8x8xf32> to vector<1x8x8xf32>
    %95 = vector.shape_cast %87 : vector<8x8xf32> to vector<1x8x8xf32>
    %96 = vector.shape_cast %88 : vector<8x8xf32> to vector<1x8x8xf32>
    %97 = vector.shape_cast %89 : vector<8x8xf32> to vector<1x8x8xf32>
    %98 = vector.shape_cast %90 : vector<8x8xf32> to vector<1x8x8xf32>
    %99 = vector.shape_cast %91 : vector<8x8xf32> to vector<1x8x8xf32>
    %100 = vector.shape_cast %92 : vector<8x8xf32> to vector<1x8x8xf32>
    %101 = tpu.concatenate %93, %94, %95, %96, %97, %98, %99, %100 in 0 : vector<1x8x8xf32>, vector<1x8x8xf32>, vector<1x8x8xf32>, vector<1x8x8xf32>, vector<1x8x8xf32>, vector<1x8x8xf32>, vector<1x8x8xf32>, vector<1x8x8xf32> -> vector<8x8x8xf32>
    %102 = arith.truncf %101 : vector<8x8x8xf32> to vector<8x8x8xbf16>
    %cst_52 = arith.constant dense<0.000000e+00> : vector<8x8x8xf32>
    %103 = tpu.matmul %66, %84, %cst_52 {dimension_numbers = #tpu.dot_dimension_numbers<[2], [2], [1], [1], [0, 0, 0, 1, 1, 1], [0], [0]>} : vector<8x8x8xbf16>, vector<8x8x8xbf16>, vector<8x8x8xf32> -> vector<8x8x8xf32>
    %104 = vector.shape_cast %9 : vector<1x8xf32> to vector<1x1x8xf32>
    %105 = vector.broadcast %104 : vector<1x1x8xf32> to vector<8x8x8xf32>
    %106 = arith.addf %103, %105 : vector<8x8x8xf32>
    %cst_53 = arith.constant dense<0xFF800000> : vector<8x8xf32>
    %107 = vector.multi_reduction <maximumf>, %106, %cst_53 [2] : vector<8x8x8xf32> to vector<8x8xf32>
    %108 = vector.shape_cast %107 : vector<8x8xf32> to vector<8x8x1xf32>
    %109 = vector.broadcast %108 : vector<8x8x1xf32> to vector<8x8x8xf32>
    %110 = arith.subf %106, %109 : vector<8x8x8xf32>
    %111 = math.exp %110 : vector<8x8x8xf32>
    %cst_54 = arith.constant dense<0.000000e+00> : vector<8x8xf32>
    %112 = vector.multi_reduction <add>, %111, %cst_54 [2] : vector<8x8x8xf32> to vector<8x8xf32>
    %113 = vector.shape_cast %112 : vector<8x8xf32> to vector<8x8x1xf32>
    %114 = tpu.reciprocal %113 {approx = true} : vector<8x8x1xf32> -> vector<8x8x1xf32>
    %115 = vector.broadcast %114 : vector<8x8x1xf32> to vector<8x8x8xf32>
    %116 = arith.mulf %111, %115 : vector<8x8x8xf32>
    %cst_55 = arith.constant dense<0.000000e+00> : vector<8x8xf32>
    %117 = vector.multi_reduction <add>, %116, %cst_55 [0] : vector<8x8x8xf32> to vector<8x8xf32>
    %cst_56 = arith.constant 8.000000e+00 : f32
    %118 = vector.broadcast %cst_56 : f32 to vector<8x8xf32>
    %119 = arith.divf %117, %118 : vector<8x8xf32>
    %c0_57 = arith.constant 0 : index
    %c0_58 = arith.constant 0 : index
    %c0_59 = arith.constant 0 : index
    %c0_60 = arith.constant 0 : index
    %120 = vector.load %arg20[%c0_57, %c0_58, %c0_59, %c0_60] : memref<1x1x8x8xf32, #tpu.memory_space<vmem>>, vector<1x1x8x8xf32>
    %121 = vector.shape_cast %120 : vector<1x1x8x8xf32> to vector<8x8xf32>
    %122 = vector.shape_cast %119 : vector<8x8xf32> to vector<1x1x8x8xf32>
    tpu.vector_store %arg20[%c0_57, %c0_58, %c0_59, %c0_60], %122 {strides = array<i32>} : memref<1x1x8x8xf32, #tpu.memory_space<vmem>>, vector<1x1x8x8xf32>,
    %123 = arith.truncf %116 : vector<8x8x8xf32> to vector<8x8x8xbf16>
    %cst_61 = arith.constant dense<0.000000e+00> : vector<8x8x8xf32>
    %124 = tpu.matmul %123, %102, %cst_61 {dimension_numbers = #tpu.dot_dimension_numbers<[2], [1], [1], [2], [0, 0, 0, 1, 1, 2], [0], [0]>} : vector<8x8x8xbf16>, vector<8x8x8xbf16>, vector<8x8x8xf32> -> vector<8x8x8xf32>
    %125 = vector.extract_strided_slice %124 {offsets = [0, 0, 0], sizes = [1, 8, 8], strides = [1, 1, 1]} : vector<8x8x8xf32> to vector<1x8x8xf32>
    %126 = vector.shape_cast %125 : vector<1x8x8xf32> to vector<8x8xf32>
    %127 = vector.extract_strided_slice %124 {offsets = [1, 0, 0], sizes = [1, 8, 8], strides = [1, 1, 1]} : vector<8x8x8xf32> to vector<1x8x8xf32>
    %128 = vector.shape_cast %127 : vector<1x8x8xf32> to vector<8x8xf32>
    %129 = vector.extract_strided_slice %124 {offsets = [2, 0, 0], sizes = [1, 8, 8], strides = [1, 1, 1]} : vector<8x8x8xf32> to vector<1x8x8xf32>
    %130 = vector.shape_cast %129 : vector<1x8x8xf32> to vector<8x8xf32>
    %131 = vector.extract_strided_slice %124 {offsets = [3, 0, 0], sizes = [1, 8, 8], strides = [1, 1, 1]} : vector<8x8x8xf32> to vector<1x8x8xf32>
    %132 = vector.shape_cast %131 : vector<1x8x8xf32> to vector<8x8xf32>
    %133 = vector.extract_strided_slice %124 {offsets = [4, 0, 0], sizes = [1, 8, 8], strides = [1, 1, 1]} : vector<8x8x8xf32> to vector<1x8x8xf32>
    %134 = vector.shape_cast %133 : vector<1x8x8xf32> to vector<8x8xf32>
    %135 = vector.extract_strided_slice %124 {offsets = [5, 0, 0], sizes = [1, 8, 8], strides = [1, 1, 1]} : vector<8x8x8xf32> to vector<1x8x8xf32>
    %136 = vector.shape_cast %135 : vector<1x8x8xf32> to vector<8x8xf32>
    %137 = vector.extract_strided_slice %124 {offsets = [6, 0, 0], sizes = [1, 8, 8], strides = [1, 1, 1]} : vector<8x8x8xf32> to vector<1x8x8xf32>
    %138 = vector.shape_cast %137 : vector<1x8x8xf32> to vector<8x8xf32>
    %139 = vector.extract_strided_slice %124 {offsets = [7, 0, 0], sizes = [1, 8, 8], strides = [1, 1, 1]} : vector<8x8x8xf32> to vector<1x8x8xf32>
    %140 = vector.shape_cast %139 : vector<1x8x8xf32> to vector<8x8xf32>
    %141 = tpu.concatenate %126, %128, %130, %132, %134, %136, %138, %140 in 1 : vector<8x8xf32>, vector<8x8xf32>, vector<8x8xf32>, vector<8x8xf32>, vector<8x8xf32>, vector<8x8xf32>, vector<8x8xf32>, vector<8x8xf32> -> vector<8x64xf32>
    %142 = arith.truncf %141 : vector<8x64xf32> to vector<8x64xbf16>
    %cst_62 = arith.constant dense<0.000000e+00> : vector<8x64xf32>
    %143 = tpu.matmul %142, %19, %cst_62 {dimension_numbers = #tpu.dot_dimension_numbers<[1], [0], [0], [1], [0, 0, 1, 1], [], []>} : vector<8x64xbf16>, vector<64x64xbf16>, vector<8x64xf32> -> vector<8x64xf32>
    %144 = vector.broadcast %21 : vector<1x64xf32> to vector<8x64xf32>
    %145 = arith.addf %143, %144 : vector<8x64xf32>
    %146 = arith.addf %3, %145 : vector<8x64xf32>
    %cst_63 = arith.constant dense<0.000000e+00> : vector<8xf32>
    %147 = vector.multi_reduction <add>, %146, %cst_63 [1] : vector<8x64xf32> to vector<8xf32>
    %148 = vector.shape_cast %147 : vector<8xf32> to vector<8x1xf32>
    %cst_64 = arith.constant 6.400000e+01 : f32
    %149 = vector.broadcast %cst_64 : f32 to vector<8x1xf32>
    %150 = arith.divf %148, %149 : vector<8x1xf32>
    %151 = vector.broadcast %150 : vector<8x1xf32> to vector<8x64xf32>
    %152 = arith.subf %146, %151 : vector<8x64xf32>
    %153 = arith.mulf %152, %152 : vector<8x64xf32>
    %cst_65 = arith.constant dense<0.000000e+00> : vector<8xf32>
    %154 = vector.multi_reduction <add>, %153, %cst_65 [1] : vector<8x64xf32> to vector<8xf32>
    %155 = vector.shape_cast %154 : vector<8xf32> to vector<8x1xf32>
    %cst_66 = arith.constant 6.400000e+01 : f32
    %156 = vector.broadcast %cst_66 : f32 to vector<8x1xf32>
    %157 = arith.divf %155, %156 : vector<8x1xf32>
    %158 = vector.broadcast %150 : vector<8x1xf32> to vector<8x64xf32>
    %159 = arith.subf %146, %158 : vector<8x64xf32>
    %cst_67 = arith.constant 9.99999974E-6 : f32
    %160 = vector.broadcast %cst_67 : f32 to vector<8x1xf32>
    %161 = arith.addf %157, %160 : vector<8x1xf32>
    %162 = math.rsqrt %161 : vector<8x1xf32>
    %163 = vector.broadcast %162 : vector<8x1xf32> to vector<8x64xf32>
    %164 = arith.mulf %159, %163 : vector<8x64xf32>
    %165 = vector.broadcast %31 : vector<1x64xf32> to vector<8x64xf32>
    %166 = arith.mulf %164, %165 : vector<8x64xf32>
    %167 = vector.broadcast %33 : vector<1x64xf32> to vector<8x64xf32>
    %168 = arith.addf %166, %167 : vector<8x64xf32>
    %169 = arith.truncf %168 : vector<8x64xf32> to vector<8x64xbf16>
    %cst_68 = arith.constant dense<0.000000e+00> : vector<8x128xf32>
    %170 = tpu.matmul %169, %23, %cst_68 {dimension_numbers = #tpu.dot_dimension_numbers<[1], [0], [0], [1], [0, 0, 1, 1], [], []>} : vector<8x64xbf16>, vector<64x128xbf16>, vector<8x128xf32> -> vector<8x128xf32>
    %171 = vector.broadcast %25 : vector<1x128xf32> to vector<8x128xf32>
    %172 = arith.addf %170, %171 : vector<8x128xf32>
    %cst_69 = arith.constant 0.000000e+00 : f32
    %173 = vector.broadcast %cst_69 : f32 to vector<8x128xf32>
    %174 = arith.maximumf %172, %173 : vector<8x128xf32>
    %175 = arith.truncf %174 : vector<8x128xf32> to vector<8x128xbf16>
    %cst_70 = arith.constant dense<0.000000e+00> : vector<8x64xf32>
    %176 = tpu.matmul %175, %27, %cst_70 {dimension_numbers = #tpu.dot_dimension_numbers<[1], [0], [0], [1], [0, 0, 1, 1], [], []>} : vector<8x128xbf16>, vector<128x64xbf16>, vector<8x64xf32> -> vector<8x64xf32>
    %177 = arith.addf %168, %176 : vector<8x64xf32>
    %178 = vector.broadcast %29 : vector<1x64xf32> to vector<8x64xf32>
    %179 = arith.addf %177, %178 : vector<8x64xf32>
    %cst_71 = arith.constant dense<0.000000e+00> : vector<8xf32>
    %180 = vector.multi_reduction <add>, %179, %cst_71 [1] : vector<8x64xf32> to vector<8xf32>
    %181 = vector.shape_cast %180 : vector<8xf32> to vector<8x1xf32>
    %cst_72 = arith.constant 6.400000e+01 : f32
    %182 = vector.broadcast %cst_72 : f32 to vector<8x1xf32>
    %183 = arith.divf %181, %182 : vector<8x1xf32>
    %184 = vector.broadcast %183 : vector<8x1xf32> to vector<8x64xf32>
    %185 = arith.subf %179, %184 : vector<8x64xf32>
    %186 = arith.mulf %185, %185 : vector<8x64xf32>
    %cst_73 = arith.constant dense<0.000000e+00> : vector<8xf32>
    %187 = vector.multi_reduction <add>, %186, %cst_73 [1] : vector<8x64xf32> to vector<8xf32>
    %188 = vector.shape_cast %187 : vector<8xf32> to vector<8x1xf32>
    %cst_74 = arith.constant 6.400000e+01 : f32
    %189 = vector.broadcast %cst_74 : f32 to vector<8x1xf32>
    %190 = arith.divf %188, %189 : vector<8x1xf32>
    %191 = vector.broadcast %183 : vector<8x1xf32> to vector<8x64xf32>
    %192 = arith.subf %179, %191 : vector<8x64xf32>
    %cst_75 = arith.constant 9.99999974E-6 : f32
    %193 = vector.broadcast %cst_75 : f32 to vector<8x1xf32>
    %194 = arith.addf %190, %193 : vector<8x1xf32>
    %195 = math.rsqrt %194 : vector<8x1xf32>
    %196 = vector.broadcast %195 : vector<8x1xf32> to vector<8x64xf32>
    %197 = arith.mulf %192, %196 : vector<8x64xf32>
    %198 = vector.broadcast %35 : vector<1x64xf32> to vector<8x64xf32>
    %199 = arith.mulf %197, %198 : vector<8x64xf32>
    %200 = vector.broadcast %37 : vector<1x64xf32> to vector<8x64xf32>
    %201 = arith.addf %199, %200 : vector<8x64xf32>
    %c0_76 = arith.constant 0 : index
    %c0_77 = arith.constant 0 : index
    %202 = vector.load %arg21[%c0_76, %c0_77] : memref<8x64xf32, #tpu.memory_space<vmem>>, vector<8x64xf32>
    tpu.vector_store %arg21[%c0_76, %c0_77], %201 {strides = array<i32>} : memref<8x64xf32, #tpu.memory_space<vmem>>, vector<8x64xf32>,
    %c0_78 = arith.constant 0 : index
    %c0_79 = arith.constant 0 : index
    %c0_80 = arith.constant 0 : index
    %203 = vector.load %arg19[%c0_78, %c0_79, %c0_80] : memref<1x8x64xf32, #tpu.memory_space<vmem>>, vector<1x8x64xf32>
    %204 = vector.shape_cast %203 : vector<1x8x64xf32> to vector<8x64xf32>
    %205 = vector.shape_cast %201 : vector<8x64xf32> to vector<1x8x64xf32>
    tpu.vector_store %arg19[%c0_78, %c0_79, %c0_80], %205 {strides = array<i32>} : memref<1x8x64xf32, #tpu.memory_space<vmem>>, vector<1x8x64xf32>,
    return
  }
  func.func @transform_0(%arg0: i32, %arg1: i32) -> (i32, i32, i32) {
    %c0_i32 = arith.constant 0 : i32
    %c0_i32_0 = arith.constant 0 : i32
    %c0_i32_1 = arith.constant 0 : i32
    return %arg0, %c0_i32, %c0_i32_0 : i32, i32, i32
  }
  func.func @transform_1(%arg0: i32, %arg1: i32) -> (i32, i32, i32) {
    %c0_i32 = arith.constant 0 : i32
    %c0_i32_0 = arith.constant 0 : i32
    %c0_i32_1 = arith.constant 0 : i32
    return %arg0, %c0_i32, %c0_i32_0 : i32, i32, i32
  }
  func.func @transform_2(%arg0: i32, %arg1: i32) -> (i32, i32, i32) {
    %c0_i32 = arith.constant 0 : i32
    %c0_i32_0 = arith.constant 0 : i32
    %c0_i32_1 = arith.constant 0 : i32
    return %arg0, %c0_i32, %c0_i32_0 : i32, i32, i32
  }
  func.func @transform_3(%arg0: i32, %arg1: i32) -> (i32, i32, i32) {
    %c0_i32 = arith.constant 0 : i32
    %c0_i32_0 = arith.constant 0 : i32
    %c0_i32_1 = arith.constant 0 : i32
    return %arg1, %c0_i32, %c0_i32_0 : i32, i32, i32
  }
  func.func @transform_4(%arg0: i32, %arg1: i32) -> (i32, i32, i32) {
    %c0_i32 = arith.constant 0 : i32
    %c0_i32_0 = arith.constant 0 : i32
    %c0_i32_1 = arith.constant 0 : i32
    return %arg1, %c0_i32, %c0_i32_0 : i32, i32, i32
  }
  func.func @transform_5(%arg0: i32, %arg1: i32) -> (i32, i32, i32) {
    %c0_i32 = arith.constant 0 : i32
    %c0_i32_0 = arith.constant 0 : i32
    %c0_i32_1 = arith.constant 0 : i32
    return %arg1, %c0_i32, %c0_i32_0 : i32, i32, i32
  }
  func.func @transform_6(%arg0: i32, %arg1: i32) -> (i32, i32, i32) {
    %c0_i32 = arith.constant 0 : i32
    %c0_i32_0 = arith.constant 0 : i32
    %c0_i32_1 = arith.constant 0 : i32
    return %arg1, %c0_i32, %c0_i32_0 : i32, i32, i32
  }
  func.func @transform_7(%arg0: i32, %arg1: i32) -> (i32, i32, i32) {
    %c0_i32 = arith.constant 0 : i32
    %c0_i32_0 = arith.constant 0 : i32
    %c0_i32_1 = arith.constant 0 : i32
    return %arg1, %c0_i32, %c0_i32_0 : i32, i32, i32
  }
  func.func @transform_8(%arg0: i32, %arg1: i32) -> (i32, i32, i32) {
    %c0_i32 = arith.constant 0 : i32
    %c0_i32_0 = arith.constant 0 : i32
    %c0_i32_1 = arith.constant 0 : i32
    return %arg1, %c0_i32, %c0_i32_0 : i32, i32, i32
  }
  func.func @transform_9(%arg0: i32, %arg1: i32) -> (i32, i32, i32) {
    %c0_i32 = arith.constant 0 : i32
    %c0_i32_0 = arith.constant 0 : i32
    %c0_i32_1 = arith.constant 0 : i32
    return %arg1, %c0_i32, %c0_i32_0 : i32, i32, i32
  }
  func.func @transform_10(%arg0: i32, %arg1: i32) -> (i32, i32, i32) {
    %c0_i32 = arith.constant 0 : i32
    %c0_i32_0 = arith.constant 0 : i32
    %c0_i32_1 = arith.constant 0 : i32
    return %arg1, %c0_i32, %c0_i32_0 : i32, i32, i32
  }
  func.func @transform_11(%arg0: i32, %arg1: i32) -> (i32, i32, i32) {
    %c0_i32 = arith.constant 0 : i32
    %c0_i32_0 = arith.constant 0 : i32
    %c0_i32_1 = arith.constant 0 : i32
    return %arg1, %c0_i32, %c0_i32_0 : i32, i32, i32
  }
  func.func @transform_12(%arg0: i32, %arg1: i32) -> (i32, i32, i32) {
    %c0_i32 = arith.constant 0 : i32
    %c0_i32_0 = arith.constant 0 : i32
    %c0_i32_1 = arith.constant 0 : i32
    return %arg1, %c0_i32, %c0_i32_0 : i32, i32, i32
  }
  func.func @transform_13(%arg0: i32, %arg1: i32) -> (i32, i32, i32) {
    %c0_i32 = arith.constant 0 : i32
    %c0_i32_0 = arith.constant 0 : i32
    %c0_i32_1 = arith.constant 0 : i32
    return %arg1, %c0_i32, %c0_i32_0 : i32, i32, i32
  }
  func.func @transform_14(%arg0: i32, %arg1: i32) -> (i32, i32, i32) {
    %c0_i32 = arith.constant 0 : i32
    %c0_i32_0 = arith.constant 0 : i32
    %c0_i32_1 = arith.constant 0 : i32
    return %arg1, %c0_i32, %c0_i32_0 : i32, i32, i32
  }
  func.func @transform_15(%arg0: i32, %arg1: i32) -> (i32, i32, i32) {
    %c0_i32 = arith.constant 0 : i32
    %c0_i32_0 = arith.constant 0 : i32
    %c0_i32_1 = arith.constant 0 : i32
    return %arg1, %c0_i32, %c0_i32_0 : i32, i32, i32
  }
  func.func @transform_16(%arg0: i32, %arg1: i32) -> (i32, i32, i32) {
    %c0_i32 = arith.constant 0 : i32
    %c0_i32_0 = arith.constant 0 : i32
    %c0_i32_1 = arith.constant 0 : i32
    return %arg1, %c0_i32, %c0_i32_0 : i32, i32, i32
  }
  func.func @transform_17(%arg0: i32, %arg1: i32) -> (i32, i32, i32) {
    %c0_i32 = arith.constant 0 : i32
    %c0_i32_0 = arith.constant 0 : i32
    %c0_i32_1 = arith.constant 0 : i32
    return %arg0, %c0_i32, %c0_i32_0 : i32, i32, i32
  }
  func.func @transform_18(%arg0: i32, %arg1: i32) -> (i32, i32, i32, i32) {
    %c0_i32 = arith.constant 0 : i32
    %c0_i32_0 = arith.constant 0 : i32
    %c0_i32_1 = arith.constant 0 : i32
    return %arg1, %arg0, %c0_i32, %c0_i32_0 : i32, i32, i32, i32
  }
}

</mosaic_0001>

<bundles_post_ra>
// kernel: tpu_custom_call.1
= control target key start
LH: loop header
LB: loop body
LE: loop exit
PB: predicated region body
PF: predicated region fallthrough
CT: control target
= control target key end

     0   :  { %s4165_s0 = inlined_call_operand.hbm [shape: f32[3,8,64], index: 0, kind: input, shape index: {}]   ;;  %s4166_s1 = inlined_call_operand.hbm [shape: f32[3,8,64], index: 1, kind: input, shape index: {}]   ;;  %s4167_s2 = inlined_call_operand.vmem [shape: f32[3,1,8], index: 2, kind: input, shape index: {}]   ;;  %s4168_s3 = inlined_call_operand.vmem [shape: bf16[1,64,128], index: 3, kind: input, shape index: {}]   ;;  %s4169_s4 = inlined_call_operand.vmem [shape: f32[1,1,128], index: 4, kind: input, shape index: {}]   ;;  %s4170_s5 = inlined_call_operand.vmem [shape: bf16[1,64,64], index: 5, kind: input, shape index: {}]   ;;  %s4171_s6 = inlined_call_operand.vmem [shape: f32[1,1,64], index: 6, kind: input, shape index: {}]   ;;  %s4172_s7 = inlined_call_operand.vmem [shape: bf16[1,64,64], index: 7, kind: input, shape index: {}]   ;;  %s4173_s8 = inlined_call_operand.vmem [shape: f32[1,1,64], index: 8, kind: input, shape index: {}]   ;;  %s4174_s9 = inlined_call_operand.hbm [shape: bf16[1,64,128], index: 9, kind: input, shape index: {}]   ;;  %s4175_s10 = inlined_call_operand.vmem [shape: f32[1,1,128], index: 10, kind: input, shape index: {}]   ;;  %s4176_s11 = inlined_call_operand.vmem [shape: bf16[1,128,64], index: 11, kind: input, shape index: {}]   ;;  %s4177_s12 = inlined_call_operand.vmem [shape: f32[1,1,64], index: 12, kind: input, shape index: {}]   ;;  %s4178_s13 = inlined_call_operand.vmem [shape: f32[1,1,64], index: 13, kind: input, shape index: {}]   ;;  %s4179_s14 = inlined_call_operand.vmem [shape: f32[1,1,64], index: 14, kind: input, shape index: {}]   ;;  %s4180_s15 = inlined_call_operand.vmem [shape: f32[1,1,64], index: 15, kind: input, shape index: {}]   ;;  %s4181_s16 = inlined_call_operand.vmem [shape: f32[1,1,64], index: 16, kind: input, shape index: {}]   ;;  %s4182_s17 = inlined_call_operand.hbm [shape: f32[3,8,64], index: 17, kind: output, shape index: {0}]   ;;  %s4183_s18 = inlined_call_operand.hbm [shape: f32[1,3,8,8], index: 18, kind: output, shape index: {1}]  }
   0x1   :  { %4199 = sst [smem:[#allocation24_spill]] %s4165_s0 }
   0x2   :  { %4200 = sst [smem:[#allocation25_spill]] %s4166_s1 }
   0x3   :  { %4201 = sst [smem:[#allocation26_spill]] %s4167_s2 }
   0x4   :  { %4202 = sst [smem:[#allocation27_spill]] %s4174_s9 }
   0x5   :  { %4203 = sst [smem:[#allocation28_spill]] %s4175_s10 }
   0x6   :  { %4204 = sst [smem:[#allocation29_spill]] %s4177_s12 }
   0x7   :  { %4205 = sst [smem:[#allocation30_spill]] %s4178_s13 }
   0x8   :  { %4206 = sst [smem:[#allocation31_spill]] %s4179_s14 }
   0x9   :  { %4207 = sst [smem:[#allocation32_spill]] %s4180_s15 }
   0xa   :  { %4208 = sst [smem:[#allocation33_spill]] %s4181_s16 }
   0xb   :  { %4209 = sst [smem:[#allocation34_spill]] %s4182_s17 }
   0xc   :  { %4210 = sst [smem:[#allocation35_spill]] %s4183_s18 }
   0xd   :  { %24 = vsyncpa [#allocation4], 0 }
   0xe   :  { %26 = vsyncpa [#allocation4 + $0x1], 0 }
   0xf   :  { %27 = vsyncpa [#allocation7], 0 }
  0x10   :  { %29 = vsyncpa [#allocation7 + $0x1], 0 }
  0x11   :  { %30 = vsyncpa [#allocation5], 0 }
  0x12   :  { %32 = vsyncpa [#allocation5 + $0x1], 0 }
  0x13   :  { %33 = vsyncpa [#allocation11], 0 }
  0x14   :  { %35 = vsyncpa [#allocation11 + $0x1], 0  ;;  %s3563_s27 = smov 0   ;;  %s3565_s28 = smov 0  }
  0x15   :  { %s3567_s29 = smov 0   ;;  %s3569_s30 = smov 0  }
  0x16   :  { %s3571_s0 = smov 0   ;;  %s3573_s19 = smov 0  }
  0x17 LB: > { %4211 = sst [smem:[#allocation17_spill]] %s3422_s27  ;;  %s3594_s1 = sadd.s32 4294967295, %s3442_s19   ;;  %s3442_s19 = sphi %s3573_s19, %s41_s19   ;;  %s3438_s0 = sphi %s3571_s0, %s4251_s0   ;;  %s3434_s30 = sphi %s3569_s30, %s4250_s30   ;;  %s3430_s29 = sphi %s3567_s29, %s4249_s29   ;;  %s3426_s28 = sphi %s3565_s28, %s4253_s28   ;;  %s3422_s27 = sphi %s3563_s27, %s4252_s27  }
  0x18   : > { %4212 = sst [smem:[#allocation18_spill]] %s3430_s29  ;;  %s2759_s20 = sadd.s32 4294967294, %s3442_s19  }
  0x19   : > { %4213 = sst [smem:[#allocation19_spill]] %s3438_s0  ;;  %p73_p0 = scmp.ne.s32.totalorder %s3426_s28, %s3422_s27 }
  0x1a   : > { %p4190_p1 = scmp.eq.s32.totalorder %s3594_s1, 0  ;;  %p519_p3 = scmp.eq.s32.totalorder %s2759_s20, 2 }
  0x1b   : > { %p2760_p5 = scmp.ge.s32.totalorder %s3442_s19, 1  ;;  %p554_p7 = scmp.lt.s32.totalorder %s3442_s19, 4 }
  0x1c   : > { %p3603_p4 = por %p4190_p1, %p73_p0  ;;  %p3608_p6 = por %p519_p3, %p73_p0 }
  0x1d   : > { %p3613_p8 = pnand %p2760_p5, %p554_p7  ;;  %s3444_s23 = smov [#allocation8]  }
  0x1e   : > { %s4214_s21 = scalar_select %p3603_p4, 1, 0 }
  0x1f   : > { %s4215_s22 = scalar_select %p3608_p6, 1, 0 }
  0x20   : > { %s4217_s2 = scalar_select %p3613_p8, 1, 0 }
  0x21   : > { %4216 = sst [smem:[#allocation20_spill]] %s4215_s22  ;;  %s611_s24 = sshll.u32 %s3444_s23, 4  ;;  %s612_s24 = int_to_ptr.vmem [resolvable:$true] %s611_s24 }
  0x22   : > { %p3082_p9 = pneg %p3613_p8  ;;  %s53_s26 = sadd.s32 1, %s3438_s0 }
  0x23   : > { %s4219_s9 = sld [smem:[#allocation27_spill]] }
  0x24   : > { %p3621_p10 = pnand %p3082_p9, %p4190_p1 }
  0x26   : > { %p3234_p12 = pneg %p3621_p10 }
  0x29   : > { %s3232_s27 = scalar_lea.hbm %s4219_s9, 512 }
  0x2a   : > { %p3233_p11 = scmp.ne.s32.totalorder %s4219_s9, %s3232_s27  ;;  %p3239_p3 = scmp.lt.u32.totalorder %s3232_s27, %s4219_s9 }
  0x2c   : > { %p3235_p13 = pnand %p3234_p12, %p3233_p11 }
  0x2e   : > { %p3236_p0 = pneg %p3235_p13 }
  0x30   : > { %p3241_p5 = pnand %p3239_p3, %p3236_p0 }
  0x32   : > { %3244 = shalt.err (!%p3241_p5)
}
  0x33   : > { %s3245_s18 = scalar_lea.vmem %s612_s24, 512  ;;  %p3253_p2 = scmp.lt.s32.totalorder %s612_s24, %s612_s24 }
  0x34   : > { %p3246_p7 = scmp.ne.s32.totalorder %s612_s24, %s3245_s18  ;;  %p3254_p6 = scmp.lt.s32.totalorder %s3245_s18, %s3245_s18 }
  0x36   : > { %p3248_p9 = pnand %p3246_p7, %p3234_p12  ;;  %p3255_p4 = por %p3254_p6, %p3253_p2 }
  0x38   : > { %p3249_p1 = pneg %p3248_p9 }
  0x3a   : > { %p3256_p8 = pnand %p3255_p4, %p3249_p1 }
  0x3c   : > { %3259 = shalt.err (!%p3256_p8)
}
  0x3d   : > { %s3445_s16 = smov 64   ;;  %s3446_s15 = smov 4  }
  0x3e   : > { %3085 = dma.hbm_to_vmem [thread:$0]  (!%p3621_p10), %s4219_s9, 512, %s612_s24, [#allocation7], %s3445_s16, %s3445_s16, %s3446_s15  }
  0x3f   : > { %p55_p1 = scmp.ge.s32.totalorder %s53_s26, 3  ;;  %s60_s18 = sadd.s32 1, %s3430_s29 }
  0x40   : > { %p67_p2 = scmp.ne.s32.totalorder %s3430_s29, %s3426_s28  ;;  %p68_p4 = scmp.eq.s32.totalorder %s3442_s19, 0 }
  0x41   : > { %s4255_s26 = smov (%p55_p1, %s53_s26), 0  ;;  %p4222_p8 = scmp.eq.s32.totalorder %s3594_s1, 2 }
  0x42   : > { %4220 = sst [smem:[#allocation21_spill]] %s4255_s26  ;;  %p3648_p6 = por %p68_p4, %p67_p2 }
  0x43   : > { %p3654_p11 = por %p4222_p8, %p67_p2  ;;  %s57_s20 = ssub.s32 %s3438_s0, %s4255_s26 }
  0x44   : > { %p3101_p10 = scmp.lt.s32.totalorder %s3442_s19, 3  ;;  %p58_p12 = scmp.eq.s32.totalorder %s57_s20, 0 }
  0x45   : > { %s4223_s25 = scalar_select %p3654_p11, 1, 0 }
  0x46   : > { %s669_s24 = sand.u32 1, %s3430_s29   ;;  %s2777_s15 = sshll.u32 %s3438_s0, 7 }
  0x47   : > { %4224 = sst [smem:[#allocation22_spill]] %s4223_s25  ;;  %s3662_s23 = sshll.u32 %s669_s24, 3 }
  0x48   : > { %s3665_s16 = scalar_select %p58_p12, %s3430_s29, %s60_s18  }
  0x49   : > { %s4226_s9 = sld [smem:[#allocation24_spill]]  ;;  %s673_s10 = scalar_lea.vmem [#allocation3], %s3662_s23 }
  0x4a   : > { %4225 = sst [smem:[#allocation23_spill]] %s3665_s16  ;;  %s680_s26 = sshll.u32 %s673_s10, 4  ;;  %s3674_s26 = int_to_ptr.vmem [resolvable:$true] %s680_s26 }
  0x4b   : > { %p3678_p13 = pnand %p3101_p10, %p3648_p6  ;;  %s4228_s16 = sld [smem:[#allocation25_spill]] }
  0x4c   : > { %s687_s27 = sand.u32 1, %s3442_s19   ;;  %s670_s29 = scalar_lea.sflag [#allocation4], %s669_s24 }
  0x4d   : > { %p3262_p3 = pneg %p3678_p13 }
  0x4f   : > { %s3671_s12 = scalar_lea.hbm %s4226_s9, %s2777_s15  ;;  %s3265_s14 = scalar_lea.hbm %s4226_s9, 384 }
  0x50   : > { %s3260_s25 = scalar_lea.hbm %s3671_s12, 128  ;;  %p3266_p9 = scmp.lt.u32.totalorder %s3671_s12, %s4226_s9 }
  0x51   : > { %s3685_s17 = scalar_lea.hbm %s4228_s16, %s2777_s15  ;;  %p3261_p0 = scmp.ne.s32.totalorder %s3671_s12, %s3260_s25 }
  0x52   : > { %p3267_p1 = scmp.lt.u32.totalorder %s3265_s14, %s3260_s25  ;;  %p3269_p4 = scmp.lt.u32.totalorder %s3260_s25, %s3671_s12 }
  0x53   : > { %p3263_p5 = pnand %p3262_p3, %p3261_p0 }
  0x54   : > { %p3268_p2 = por %p3267_p1, %p3266_p9 }
  0x55   : > { %p3264_p7 = pneg %p3263_p5 }
  0x56   : > { %p3270_p6 = por %p3269_p4, %p3268_p2 }
  0x58   : > { %p3271_p8 = pnand %p3270_p6, %p3264_p7 }
  0x5a   : > { %3274 = shalt.err (!%p3271_p8)
}
  0x5b   : > { %s3275_s24 = scalar_lea.vmem %s3674_s26, 128  ;;  %s3447_s15 = smov [#allocation3]  }
  0x5c   : > { %p3276_p10 = scmp.ne.s32.totalorder %s3674_s26, %s3275_s24  ;;  %s3280_s18 = sshll.u32 %s3447_s15, 4  ;;  %s3281_s18 = int_to_ptr.vmem [resolvable:$false] %s3280_s18 }
  0x5d   : > { %s3282_s13 = scalar_lea.vmem %s3281_s18, 256  ;;  %p3283_p5 = scmp.lt.s32.totalorder %s3674_s26, %s3281_s18 }
  0x5e   : > { %p3278_p12 = pnand %p3276_p10, %p3262_p3  ;;  %p3284_p9 = scmp.lt.s32.totalorder %s3282_s13, %s3275_s24 }
  0x60   : > { %p3279_p0 = pneg %p3278_p12  ;;  %p3285_p1 = por %p3284_p9, %p3283_p5 }
  0x62   : > { %p3286_p2 = pnand %p3285_p1, %p3279_p0 }
  0x64   : > { %3289 = shalt.err (!%p3286_p2)
}
  0x65   : > { %3089 = dma.hbm_to_vmem [thread:$0]  (!%p3678_p13), %s3671_s12, 128, %s3674_s26, %s670_s29  }
  0x66   : > { %s691_s14 = scalar_lea.vmem [#allocation6], %s3662_s23  ;;  %s688_s10 = scalar_lea.sflag [#allocation7], %s687_s27 }
  0x67   : > { %s698_s25 = sshll.u32 %s691_s14, 4  ;;  %s3290_s22 = scalar_lea.hbm %s3685_s17, 128  ;;  %s699_s25 = int_to_ptr.vmem [resolvable:$true] %s698_s25 }
  0x68   : > { %p3291_p7 = scmp.ne.s32.totalorder %s3685_s17, %s3290_s22  ;;  %s3295_s15 = scalar_lea.hbm %s4228_s16, 384 }
  0x69   : > { %p3296_p8 = scmp.lt.u32.totalorder %s3685_s17, %s4228_s16  ;;  %p3297_p10 = scmp.lt.u32.totalorder %s3295_s15, %s3290_s22 }
  0x6a   : > { %p3293_p4 = pnand %p3291_p7, %p3262_p3  ;;  %p3299_p0 = scmp.lt.u32.totalorder %s3290_s22, %s3685_s17 }
  0x6b   : > { %p3298_p12 = por %p3297_p10, %p3296_p8 }
  0x6c   : > { %p3294_p6 = pneg %p3293_p4 }
  0x6d   : > { %p3300_p5 = por %p3299_p0, %p3298_p12 }
  0x6f   : > { %p3301_p9 = pnand %p3300_p5, %p3294_p6 }
  0x71   : > { %3304 = shalt.err (!%p3301_p9)
}
  0x72   : > { %s3305_s12 = scalar_lea.vmem %s699_s25, 128  ;;  %s3448_s29 = smov [#allocation6]  }
  0x73   : > { %p3306_p1 = scmp.ne.s32.totalorder %s699_s25, %s3305_s12  ;;  %s3310_s26 = sshll.u32 %s3448_s29, 4  ;;  %s3311_s26 = int_to_ptr.vmem [resolvable:$false] %s3310_s26 }
  0x74   : > { %s3312_s23 = scalar_lea.vmem %s3311_s26, 256  ;;  %p3313_p4 = scmp.lt.s32.totalorder %s699_s25, %s3311_s26 }
  0x75   : > { %p3308_p2 = pnand %p3306_p1, %p3262_p3  ;;  %p3314_p11 = scmp.lt.s32.totalorder %s3312_s23, %s3305_s12 }
  0x77   : > { %p3309_p7 = pneg %p3308_p2  ;;  %p3315_p8 = por %p3314_p11, %p3313_p4 }
  0x79   : > { %p3316_p10 = pnand %p3315_p8, %p3309_p7 }
  0x7b   : > { %3319 = shalt.err (!%p3316_p10)
}
  0x7c   : > { %3092 = dma.hbm_to_vmem [thread:$0]  (!%p3678_p13), %s3685_s17, 128, %s699_s25, %s688_s10  }
  0x7d   : > { %p4229_p6 = scmp.ne.s32.totalorder %s4217_s2, 0 }
  0x7e   : > { %s3738_s27 = sand.u32 (!%p4229_p6), 1, %s3426_s28   ;;  %p4230_p11 = scmp.ne.s32.totalorder (!%p4229_p6), %s4214_s21, 0 }
  0x7f   : > { %713 = sbr.rel (%p4229_p6) target bundleno = 2834 (0xb12), region = 88  ;;  %s3741_s14 = sshll.u32 (!%p4229_p6), %s3738_s27, 3 }
  0x80   : > { %s716_s22 = scalar_lea.sflag (!%p4229_p6), [#allocation4], %s3738_s27  ;;  %s719_s0 = scalar_lea.vmem (!%p4229_p6), [#allocation3], %s3741_s14 }
  0x86   : > { %3401 = dma.done.wait (%p4230_p11), %s716_s22, 128  }
  0x87   : > { %3403 = vsyncadd (%p4230_p11), %s716_s22, 4294967168  ;;  %s724_s2 = sand.u32 1, %s3594_s1   ;;  %s728_s17 = scalar_lea.vmem [#allocation6], %s3741_s14 }
  0x88   : > { %s725_s20 = scalar_lea.sflag [#allocation7], %s724_s2 }
  0x89   : > { %3405 = dma.done.wait (%p4230_p11), %s725_s20, 128  }
  0x8a   : > { %3407 = vsyncadd (%p4230_p11), %s725_s20, 4294967168  ;;  %p4231_p13 = scmp.eq.s32.totalorder %s3594_s1, 0 }
  0x8c   : > { %3409 = dma.done.wait (%p4231_p13), [#allocation7], 512   ;;  %p4232_p3 = pmov %p4231_p13 }
  0x8d   : > { %v3449_v0 = vmov 0.0   ;;  %vm3450_vm0 = vmmov 0   ;;  %v3172_v1 = vld [vmem:[%s4168_s3] sm:$0xff]   ;;  %v3173_v2 = vld [vmem:[%s4168_s3 + $0x8] sm:$0xff]   ;;  %vm901_vm1 = vcmask 523264   ;;  %v3174_v3 = vld [vmem:[%s4168_s3 + $0x10] sm:$0xff]   ;;  %v1175_v60 = vlaneseq }
  0x8e   : > { %3411 = vsyncadd (%p4232_p3), [#allocation7], 4294966784  ;;  %2906 = vmatprep.subr.bf16.mxu1 %v3449_v0  ;;  %2914 = vmatprep.mubr.msk.bf16.mxu1 %vm3450_vm0, %v3449_v0  ;;  %v900_v4 = vld [vmem:[%s719_s0] sm:$0xff]  ;;  %v3175_v5 = vld [vmem:[%s4168_s3 + $0x18] sm:$0xff]   ;;  %s3451_s26 = smov 104   ;;  %s3452_s23 = smov 120  }
  0x8f   : > { %2930 = vmatprep.subr.bf16.mxu0 %v3449_v0  ;;  %2932 = vmatprep.mubr.msk.bf16.mxu0 %vm3450_vm0, %v3449_v0  ;;  %902 = vst.msk [vmem:[#allocation2] sm:$0xff] %vm901_vm1, %v900_v4  ;;  %v904_v6 = vld [vmem:[%s728_s17] sm:$0xff]  ;;  %s3453_s22 = smov 96   ;;  %s3454_s0 = smov 112   ;;  %v3177_v17 = vld [vmem:[%s4170_s5 + $0x8] sm:$0xff]   ;;  %v3178_v19 = vld [vmem:[%s4170_s5 + $0x10] sm:$0xff]  }
  0x90   : > { %2907 = vmatpush3.bf16.msra.mxu1 %v3172_v1  ;;  %v2786_v10 = vld [vmem:[%s4169_s4] ss:$0 sm:$0xff]  ;;  %s3455_s17 = smov 80   ;;  %s3456_s21 = smov 88   ;;  %v3179_v20 = vld [vmem:[%s4170_s5 + $0x18] sm:$0xff]   ;;  %vm1183_vm2 = vcmask 64512  }
  0x91   : > { %2908 = vmatprep.subr.bf16.mxu1 %v3449_v0  ;;  %v3176_v16 = vld [vmem:[%s4170_s5] sm:$0xff]   ;;  %s3457_s1 = smov 72   ;;  %s3458_s24 = smov 64   ;;  %vm1690_vm3 = vcmask 1043456   ;;  %v1176_v61 = vshrl.u32 %v1175_v60, 7  ;;  %vm2085_vm4 = vcmask 130048  }
  0x92   : > { %v2792_v40 = vld [vmem:[%s4171_s6] ss:$0 sm:$0xff]  ;;  %p845_p12 = scmp.lt.s32.totalorder %s3434_s30, 2  ;;  %s4233_s10 = sld [smem:[#allocation26_spill]]  ;;  %vm2087_vm5 = vcmask 195584   ;;  %vm2089_vm6 = vcmask 261120  }
  0x93   : > { %v1177_v1 = vsub.s32 0, %v1176_v61  ;;  %s3461_s12 = smov 24   ;;  %s3463_s20 = smov 40   ;;  %vm2091_vm7 = vcmask 326656   ;;  %vm2093_vm8 = vcmask 392192   ;;  %vm2095_vm9 = vcmask 457728  }
  0x94   : > { %2909 = vmatpush3.bf16.msra.mxu1 %v3173_v2  ;;  %s3464_s25 = smov 48   ;;  %s4236_s29 = sld [smem:[#allocation28_spill]] }
  0x95   : > { %2910 = vmatprep.subr.bf16.mxu1 %v3449_v0  ;;  %s2407_s15 = scalar_lea.sflag [#allocation11], %s3738_s27  ;;  %s3466_s13 = smov [#allocation10]  }
  0x96   : > { %v3781_v7 = vld [vmem:[#allocation2] sm:$0xff] }
  0x97   : > { %v964_v8 = vadd.f32 %v904_v6, %v3781_v7  ;;  %v1040_v21 = vpack.c.bf16 %v3781_v7, %v3781_v7 }
  0x98   : > { %2911 = vmatpush3.bf16.msra.mxu1 %v3174_v3 }
  0x99   : > { %2912 = vmatprep.subr.bf16.mxu1 %v3449_v0  ;;  %v965_v9 = vpack.c.bf16 %v964_v8, %v964_v8 }
  0x9c   : > { %2913 = vmatpush3.bf16.msra.mxu1 %v3175_v5 }
  0x9d   : > { %2918 = vmatprep.subr.bf16.mxu1 %v3449_v0 }
  0x9f   : > { %2915 = vmatmul.mubr.msk.bf16.vlgmr.msra.gmra.mrb[0].mxu1 %vm901_vm1, %v965_v9 }
  0xa0   : > { %2926 = vmatprep.mubr.msk.bf16.mxu1 %vm3450_vm0, %v3449_v0  ;;  %2919 = vmatpush3.bf16.msra.mxu1 %v3176_v16 }
  0xa1   : > { %2920 = vmatprep.subr.bf16.mxu1 %v3449_v0 }
  0xa4   : > { %2921 = vmatpush3.bf16.msra.mxu1 %v3177_v17 }
  0xa5   : > { %2922 = vmatprep.subr.bf16.mxu1 %v3449_v0 }
  0xa8   : > { %2923 = vmatpush3.bf16.msra.mxu1 %v3178_v19 }
  0xa9   : > { %2924 = vmatprep.subr.bf16.mxu1 %v3449_v0 }
  0xac   : > { %2925 = vmatpush3.bf16.msra.mxu1 %v3179_v20 }
  0xad   : > { %2936 = vmatprep.subr.bf16.mxu1 %v3449_v0 }
  0xaf   : > { %2927 = vmatmul.mubr.msk.bf16.vlgmr.msra.gmra.mrb[4].mxu1 %vm901_vm1, %v1040_v21 }
  0xb0   : > { %2938 = vmatprep.mubr.msk.bf16.mxu1 %vm3450_vm0, %v3449_v0 }
 0x172   : > { %v1034_v11 = vpop.f32.mrb[0].mxu1 }
 0x173   : > { %v1035_v12 = vadd.f32 %v2786_v10, %v1034_v11  ;;  %v2916_v13 = vpop.f32.mrb[1].mxu1 }
 0x174   : > { %v1037_v14 = vpop.f32.mrb[2].mxu1 }
 0x175   : > { %1121 = vrot.lane.b32.xlu1 %v1035_v12, %s3451_s26  ;;  %1115 = vrot.lane.b32.xlu0 %v1035_v12, %s3452_s23  ;;  %v2917_v15 = vpop.f32.mrb[3].mxu1  ;;  %v1136_v18 = vpack.c.bf16 %v1035_v12, %v1035_v12 }
 0x179   : > { %1124 = vrot.lane.b32.xlu1 %v1035_v12, %s3453_s22  ;;  %1118 = vrot.lane.b32.xlu0 %v1035_v12, %s3454_s0 }
 0x17d   : > { %1130 = vrot.lane.b32.xlu1 %v1035_v12, %s3455_s17  ;;  %1127 = vrot.lane.b32.xlu0 %v1035_v12, %s3456_s21 }
 0x181   : > { %1133 = vrot.lane.b32.xlu0 %v1035_v12, %s3457_s1  ;;  %1181 = vrot.lane.b32.xlu1 %v1136_v18, %s3458_s24 }
 0x182   : > { %v1108_v43 = vpop.f32.mrb[4].mxu1 }
 0x183   : > { %v3838_v45 = vadd.f32 %v2792_v40, %v1108_v43  ;;  %v2928_v46 = vpop.f32.mrb[5].mxu1 }
 0x184   : > { %v1111_v47 = vpop.f32.mrb[6].mxu1 }
 0x185   : > { %v2929_v49 = vpop.f32.mrb[7].mxu1  ;;  %v1166_v57 = vpack.c.bf16 %v3838_v45, %v3838_v45 }
 0x187   : > { %v1692_v59 = vsel %vm1690_vm3, %v1166_v57, 0 }
 0x1e7   : > { %v1122_v22 = vpop.permute.xlu1 %1121  ;;  %v1116_v23 = vpop.permute.xlu0 %1115 }
 0x1e8   : > { %v1137_v24 = vpack.c.bf16 %v1116_v23, %v1116_v23  ;;  %v1139_v27 = vpack.c.bf16 %v1122_v22, %v1122_v22 }
 0x1ea   : > { %1231 = vrot.lane.b32.xlu0 %v1137_v24, %s3458_s24 }
 0x1eb   : > { %v1125_v25 = vpop.permute.xlu1 %1124  ;;  %v1119_v26 = vpop.permute.xlu0 %1118 }
 0x1ec   : > { %v1138_v28 = vpack.c.bf16 %v1119_v26, %v1119_v26  ;;  %v1140_v31 = vpack.c.bf16 %v1125_v25, %v1125_v25 }
 0x1ee   : > { %1329 = vrot.lane.b32.xlu0 %v1139_v27, %s3458_s24  ;;  %1280 = vrot.lane.b32.xlu1 %v1138_v28, %s3458_s24 }
 0x1ef   : > { %v1131_v29 = vpop.permute.xlu1 %1130  ;;  %v1128_v30 = vpop.permute.xlu0 %1127 }
 0x1f0   : > { %v1141_v32 = vpack.c.bf16 %v1128_v30, %v1128_v30  ;;  %v1142_v35 = vpack.c.bf16 %v1131_v29, %v1131_v29 }
 0x1f2   : > { %1427 = vrot.lane.b32.xlu0 %v1141_v32, %s3458_s24  ;;  %1378 = vrot.lane.b32.xlu1 %v1140_v31, %s3458_s24 }
 0x1f3   : > { %v1134_v33 = vpop.permute.xlu0 %1133  ;;  %v1182_v34 = vpop.permute.xlu1 %1181 }
 0x1f4   : > { %v1143_v36 = vpack.c.bf16 %v1134_v33, %v1134_v33  ;;  %v1188_v37 = vsel %vm1183_vm2, %v1182_v34, 0 }
 0x1f5   : > { %2931 = vmatpush3.bf16.xpose.msra.mxu0 %v1188_v37 }
 0x1f6   : > { %1525 = vrot.lane.b32.xlu0 %v1143_v36, %s3458_s24  ;;  %1476 = vrot.lane.b32.xlu1 %v1142_v35, %s3458_s24 }
 0x1f7   : > { %2942 = vmatprep.subr.bf16.mxu0 %v3449_v0 }
 0x1fa   : > { %1145 = vrot.lane.b32.xlu0 %v3838_v45, %s3452_s23  ;;  %s846_s23 = scalar_select %p845_p12, %s3434_s30, 2 }
 0x1fc   : > { %2933 = vmatmul.mubr.msk.bf16.vlgmr.msra.gmra.mrb[0].mxu0 %vm1183_vm2, %v1136_v18  ;;  %s847_s24 = scalar_lea.vmem %s4233_s10, %s846_s23  ;;  %s3462_s23 = smov 32  }
 0x1fd   : > { %2944 = vmatprep.mubr.msk.bf16.mxu0 %vm3450_vm0, %v3449_v0  ;;  %v905_v62 = vld [vmem:[%s847_s24] sm:$0x1]  ;;  %s3465_s10 = smov 56   ;;  %s4234_s24 = sld [smem:[#allocation30_spill]] }
 0x1fe   : > { %v906_v63 = vmul.f32 -1e+09, %v905_v62 }
 0x200   : > { %v1178_v2 = vrot.slane %v906_v63, %v1177_v1 }
 0x25c   : > { %v1232_v38 = vpop.permute.xlu0 %1231 }
 0x25d   : > { %v1237_v39 = vsel %vm1183_vm2, %v1232_v38, 0 }
 0x25e   : > { %2937 = vmatpush3.bf16.xpose.msra.mxu1 %v1237_v39 }
 0x25f   : > { %2948 = vmatprep.subr.bf16.mxu1 %v3449_v0 }
 0x260   : > { %v1281_v41 = vpop.permute.xlu1 %1280  ;;  %v1330_v44 = vpop.permute.xlu0 %1329 }
 0x261   : > { %v1286_v42 = vsel %vm1183_vm2, %v1281_v41, 0  ;;  %v1335_v48 = vsel %vm1183_vm2, %v1330_v44, 0 }
 0x262   : > { %2943 = vmatpush3.bf16.xpose.msra.mxu0 %v1286_v42 }
 0x263   : > { %2954 = vmatprep.subr.bf16.mxu0 %v3449_v0 }
 0x264   : > { %v1379_v50 = vpop.permute.xlu1 %1378  ;;  %v1428_v52 = vpop.permute.xlu0 %1427 }
 0x265   : > { %2939 = vmatmul.mubr.msk.bf16.vlgmr.msra.gmra.mrb[8].mxu1 %vm1183_vm2, %v1137_v24  ;;  %v1384_v51 = vsel %vm1183_vm2, %v1379_v50, 0  ;;  %v1433_v53 = vsel %vm1183_vm2, %v1428_v52, 0 }
 0x266   : > { %2949 = vmatpush3.bf16.xpose.msra.mxu1 %v1335_v48  ;;  %2950 = vmatprep.mubr.msk.bf16.mxu1 %vm3450_vm0, %v3449_v0 }
 0x267   : > { %2960 = vmatprep.subr.bf16.mxu1 %v3449_v0 }
 0x268   : > { %v1477_v54 = vpop.permute.xlu1 %1476  ;;  %v1526_v56 = vpop.permute.xlu0 %1525 }
 0x269   : > { %2945 = vmatmul.mubr.msk.bf16.vlgmr.msra.gmra.mrb[4].mxu0 %vm1183_vm2, %v1138_v28  ;;  %v1482_v55 = vsel %vm1183_vm2, %v1477_v54, 0  ;;  %v1531_v58 = vsel %vm1183_vm2, %v1526_v56, 0 }
 0x26a   : > { %2955 = vmatpush3.bf16.xpose.msra.mxu0 %v1384_v51  ;;  %2956 = vmatprep.mubr.msk.bf16.mxu0 %vm3450_vm0, %v3449_v0 }
 0x26b   : > { %2966 = vmatprep.subr.bf16.mxu0 %v3449_v0 }
 0x26c   : > { %v1146_v10 = vpop.permute.xlu0 %1145 }
 0x26d   : > { %2951 = vmatmul.mubr.msk.bf16.vlgmr.msra.gmra.mrb[12].mxu1 %vm1183_vm2, %v1139_v27  ;;  %v1167_v11 = vpack.c.bf16 %v1146_v10, %v1146_v10 }
 0x26e   : > { %2961 = vmatpush3.bf16.xpose.msra.mxu1 %v1433_v53  ;;  %2962 = vmatprep.mubr.msk.bf16.mxu1 %vm3450_vm0, %v3449_v0 }
 0x26f   : > { %2972 = vmatprep.subr.bf16.mxu1 %v3449_v0  ;;  %v1738_v12 = vsel %vm1690_vm3, %v1167_v11, 0 }
 0x271   : > { %2957 = vmatmul.mubr.msk.bf16.vlgmr.msra.gmra.mrb[8].mxu0 %vm1183_vm2, %v1140_v31 }
 0x272   : > { %2967 = vmatpush3.bf16.xpose.msra.mxu0 %v1482_v55  ;;  %2968 = vmatprep.mubr.msk.bf16.mxu0 %vm3450_vm0, %v3449_v0 }
 0x273   : > { %2978 = vmatprep.subr.bf16.mxu0 %v3449_v0 }
 0x275   : > { %2963 = vmatmul.mubr.msk.bf16.vlgmr.msra.gmra.mrb[16].mxu1 %vm1183_vm2, %v1141_v32 }
 0x276   : > { %2973 = vmatpush3.bf16.xpose.msra.mxu1 %v1531_v58  ;;  %2974 = vmatprep.mubr.msk.bf16.mxu1 %vm3450_vm0, %v3449_v0 }
 0x277   : > { %2984 = vmatprep.subr.bf16.mxu1 %v3449_v0 }
 0x279   : > { %2969 = vmatmul.mubr.msk.bf16.vlgmr.msra.gmra.mrb[12].mxu0 %vm1183_vm2, %v1142_v35 }
 0x27a   : > { %2979 = vmatpush3.bf16.msra.mxu0 %v1692_v59  ;;  %2980 = vmatprep.mubr.msk.bf16.mxu0 %vm3450_vm0, %v3449_v0 }
 0x27b   : > { %2990 = vmatprep.subr.bf16.mxu0 %v3449_v0 }
 0x27d   : > { %2975 = vmatmul.mubr.msk.bf16.vlgmr.msra.gmra.mrb[20].mxu1 %vm1183_vm2, %v1143_v36 }
 0x27e   : > { %2986 = vmatprep.mubr.msk.bf16.mxu1 %vm3450_vm0, %v3449_v0  ;;  %2985 = vmatpush3.bf16.msra.mxu1 %v1738_v12 }
 0x27f   : > { %2996 = vmatprep.subr.bf16.mxu1 %v3449_v0 }
 0x2cf   : > { %v1224_v3 = vpop.f32.mrb[0].mxu0 }
 0x2d0   : > { %v3883_v4 = vadd.f32 %v1224_v3, %v1178_v2  ;;  %v2934_v5 = vpop.f32.mrb[1].mxu0 }
 0x2d1   : > { %v1227_v6 = vpop.f32.mrb[2].mxu0 }
 0x2d2   : > { %v2935_v8 = vpop.f32.mrb[3].mxu0  ;;  %v1573_v9 = vsel %vm1183_vm2, %v3883_v4, -inf }
 0x2d3   : > { %1574 = vmax.xlane.f32.xlu1 %v1573_v9 }
 0x338   : > { %v1273_v13 = vpop.f32.mrb[8].mxu1 }
 0x339   : > { %v1274_v14 = vadd.f32 %v1273_v13, %v1178_v2  ;;  %v2940_v15 = vpop.f32.mrb[9].mxu1 }
 0x33a   : > { %v1276_v16 = vpop.f32.mrb[10].mxu1 }
 0x33b   : > { %v2941_v17 = vpop.f32.mrb[11].mxu1  ;;  %v1576_v18 = vsel %vm1183_vm2, %v1274_v14, -inf }
 0x33c   : > { %v1322_v19 = vpop.f32.mrb[4].mxu0  ;;  %1577 = vmax.xlane.f32.xlu0 %v1576_v18 }
 0x33d   : > { %v1323_v20 = vadd.f32 %v1322_v19, %v1178_v2  ;;  %v2946_v21 = vpop.f32.mrb[5].mxu0 }
 0x33e   : > { %v1325_v22 = vpop.f32.mrb[6].mxu0 }
 0x33f   : > { %v2947_v23 = vpop.f32.mrb[7].mxu0  ;;  %v1579_v24 = vsel %vm1183_vm2, %v1323_v20, -inf }
 0x340   : > { %1580 = vmax.xlane.f32.xlu0 %v1579_v24  ;;  %v1371_v25 = vpop.f32.mrb[12].mxu1 }
 0x341   : > { %v3891_v26 = vadd.f32 %v1371_v25, %v1178_v2  ;;  %v2952_v27 = vpop.f32.mrb[13].mxu1 }
 0x342   : > { %v1374_v28 = vpop.f32.mrb[14].mxu1 }
 0x343   : > { %v2953_v29 = vpop.f32.mrb[15].mxu1  ;;  %v1582_v30 = vsel %vm1183_vm2, %v3891_v26, -inf }
 0x344   : > { %v1420_v31 = vpop.f32.mrb[8].mxu0  ;;  %1583 = vmax.xlane.f32.xlu1 %v1582_v30 }
 0x345   : > { %v1421_v32 = vadd.f32 %v1420_v31, %v1178_v2  ;;  %v2958_v33 = vpop.f32.mrb[9].mxu0 }
 0x346   : > { %v1423_v34 = vpop.f32.mrb[10].mxu0 }
 0x347   : > { %v2959_v35 = vpop.f32.mrb[11].mxu0  ;;  %v1585_v36 = vsel %vm1183_vm2, %v1421_v32, -inf }
 0x348   : > { %1586 = vmax.xlane.f32.xlu0 %v1585_v36  ;;  %v1469_v37 = vpop.f32.mrb[16].mxu1 }
 0x349   : > { %v1470_v38 = vadd.f32 %v1469_v37, %v1178_v2  ;;  %v2964_v39 = vpop.f32.mrb[17].mxu1 }
 0x34a   : > { %v1472_v40 = vpop.f32.mrb[18].mxu1 }
 0x34b   : > { %v2965_v41 = vpop.f32.mrb[19].mxu1  ;;  %v1588_v42 = vsel %vm1183_vm2, %v1470_v38, -inf }
 0x34c   : > { %v1518_v43 = vpop.f32.mrb[12].mxu0  ;;  %1589 = vmax.xlane.f32.xlu1 %v1588_v42 }
 0x34d   : > { %v1519_v44 = vadd.f32 %v1518_v43, %v1178_v2  ;;  %v2970_v46 = vpop.f32.mrb[13].mxu0 }
 0x34e   : > { %v1521_v47 = vpop.f32.mrb[14].mxu0 }
 0x34f   : > { %v2971_v48 = vpop.f32.mrb[15].mxu0  ;;  %v1591_v49 = vsel %vm1183_vm2, %v1519_v44, -inf }
 0x350   : > { %1592 = vmax.xlane.f32.xlu0 %v1591_v49  ;;  %v1567_v50 = vpop.f32.mrb[20].mxu1 }
 0x351   : > { %v1568_v51 = vadd.f32 %v1567_v50, %v1178_v2  ;;  %v2976_v52 = vpop.f32.mrb[21].mxu1 }
 0x352   : > { %v1570_v53 = vpop.f32.mrb[22].mxu1 }
 0x353   : > { %v2977_v54 = vpop.f32.mrb[23].mxu1  ;;  %v1594_v55 = vsel %vm1183_vm2, %v1568_v51, -inf }
 0x354   : > { %1595 = vmax.xlane.f32.xlu1 %v1594_v55 }
 0x360   : > { %v1575_v56 = vpop.xlane.xlu1 %1574 }
 0x361   : > { %v1597_v57 = vsub.f32 %v3883_v4, %v1575_v56 }
 0x363   : > { %v1605_v58 = vmul.f32 1.442695, %v1597_v57 }
 0x365   : > { %1148 = vrot.lane.b32.xlu1 %v3838_v45, %s3454_s0  ;;  %3196 = vpow2.f32 %v1605_v58  ;;  %s3460_s0 = smov 16  }
 0x366   : > { %1151 = vrot.lane.b32.xlu0 %v3838_v45, %s3451_s26  ;;  %s844_s26 = scalar_lea.vmem [#allocation10], %s3741_s14 }
 0x36f   : > { %v3197_v59 = vpop.eup %3196 }
 0x370   : > { %v1621_v60 = vsel %vm1183_vm2, %v3197_v59, 0.0 }
 0x385   : > { %1622 = vadd.xlane.f32.xlu0 %v1621_v60 }
 0x3c9   : > { %v1578_v61 = vpop.xlane.xlu0 %1577 }
 0x3ca   : > { %v1598_v62 = vsub.f32 %v1274_v14, %v1578_v61 }
 0x3cc   : > { %v1607_v63 = vmul.f32 1.442695, %v1598_v62 }
 0x3cd   : > { %v1581_v1 = vpop.xlane.xlu0 %1580 }
 0x3ce   : > { %3198 = vpow2.f32 %v1607_v63  ;;  %v1599_v2 = vsub.f32 %v1323_v20, %v1581_v1 }
 0x3d0   : > { %v1609_v3 = vmul.f32 1.442695, %v1599_v2 }
 0x3d1   : > { %v1584_v9 = vpop.xlane.xlu1 %1583 }
 0x3d2   : > { %3200 = vpow2.f32 %v1609_v3  ;;  %v1600_v10 = vsub.f32 %v3891_v26, %v1584_v9 }
 0x3d4   : > { %v1611_v14 = vmul.f32 1.442695, %v1600_v10 }
 0x3d5   : > { %v1587_v11 = vpop.xlane.xlu0 %1586 }
 0x3d6   : > { %v1601_v13 = vsub.f32 %v1421_v32, %v1587_v11  ;;  %3202 = vpow2.f32 %v1611_v14 }
 0x3d8   : > { %v3905_v5 = vpop.eup %3198  ;;  %v1613_v17 = vmul.f32 1.442695, %v1601_v13 }
 0x3d9   : > { %v1624_v6 = vsel %vm1183_vm2, %v3905_v5, 0.0  ;;  %v1590_v12 = vpop.xlane.xlu1 %1589 }
 0x3da   : > { %1625 = vadd.xlane.f32.xlu1 %v1624_v6  ;;  %v1602_v15 = vsub.f32 %v1470_v38, %v1590_v12  ;;  %3204 = vpow2.f32 %v1613_v17 }
 0x3dc   : > { %v3909_v4 = vpop.eup %3200  ;;  %v1615_v18 = vmul.f32 1.442695, %v1602_v15 }
 0x3dd   : > { %v1627_v8 = vsel %vm1183_vm2, %v3909_v4, 0.0  ;;  %v1593_v16 = vpop.xlane.xlu0 %1592 }
 0x3de   : > { %1628 = vadd.xlane.f32.xlu0 %v1627_v8  ;;  %v1603_v19 = vsub.f32 %v1519_v44, %v1593_v16  ;;  %3206 = vpow2.f32 %v1615_v18 }
 0x3e0   : > { %v1617_v21 = vmul.f32 1.442695, %v1603_v19  ;;  %v3918_v24 = vpop.eup %3202 }
 0x3e1   : > { %v1596_v20 = vpop.xlane.xlu1 %1595  ;;  %v1152_v26 = vpop.permute.xlu0 %1151  ;;  %v1630_v27 = vsel %vm1183_vm2, %v3918_v24, 0.0 }
 0x3e2   : > { %v1604_v22 = vsub.f32 %v1568_v51, %v1596_v20  ;;  %3208 = vpow2.f32 %v1617_v21  ;;  %v1169_v46 = vpack.c.bf16 %v1152_v26, %v1152_v26 }
 0x3e4   : > { %v1619_v23 = vmul.f32 1.442695, %v1604_v22  ;;  %v3920_v25 = vpop.eup %3204  ;;  %v1830_v51 = vsel %vm1690_vm3, %v1169_v46, 0 }
 0x3e5   : > { %v1633_v30 = vsel %vm1183_vm2, %v3920_v25, 0.0  ;;  %v1149_v36 = vpop.permute.xlu1 %1148 }
 0x3e6   : > { %3210 = vpow2.f32 %v1619_v23  ;;  %v1168_v38 = vpack.c.bf16 %v1149_v36, %v1149_v36 }
 0x3e8   : > { %v3924_v28 = vpop.eup %3206  ;;  %v1784_v41 = vsel %vm1690_vm3, %v1168_v38, 0 }
 0x3e9   : > { %v1636_v31 = vsel %vm1183_vm2, %v3924_v28, 0.0 }
 0x3eb   : > { %1157 = vrot.lane.b32.xlu1 %v3838_v45, %s3456_s21 }
 0x3ec   : > { %v3930_v32 = vpop.eup %3208 }
 0x3ed   : > { %v1639_v33 = vsel %vm1183_vm2, %v3930_v32, 0.0 }
 0x3f0   : > { %v3934_v34 = vpop.eup %3210 }
 0x3f1   : > { %v1642_v35 = vsel %vm1183_vm2, %v3934_v34, 0.0 }
 0x3f4   : > { %1154 = vrot.lane.b32.xlu0 %v3838_v45, %s3453_s22  ;;  %s3459_s22 = smov 8  }
 0x40f   : > { %1631 = vadd.xlane.f32.xlu1 %v1630_v27 }
 0x412   : > { %v1623_v29 = vpop.xlane.xlu0 %1622 }
 0x413   : > { %3212 = vrcp.f32 %v1623_v29  ;;  %1634 = vadd.xlane.f32.xlu0 %v1633_v30  ;;  %1637 = vadd.xlane.f32.xlu1 %v1636_v31 }
 0x417   : > { %1640 = vadd.xlane.f32.xlu1 %v1639_v33 }
 0x41b   : > { %1643 = vadd.xlane.f32.xlu1 %v1642_v35 }
 0x41d   : > { %v3213_v37 = vpop.eup %3212 }
 0x41e   : > { %v1653_v39 = vmul.f32 %v3213_v37, %v3197_v59 }
 0x420   : > { %v1679_v40 = vpack.c.bf16 %v1653_v39, %v1653_v39  ;;  %v1661_v62 = vsel %vm1183_vm2, %v1653_v39, 0.0 }
 0x422   : > { %2981 = vmatmul.mubr.msk.bf16.vlgmr.msra.gmra.mrb[16].mxu0 %vm1183_vm2, %v1679_v40 }
 0x423   : > { %2991 = vmatpush3.bf16.msra.mxu0 %v1784_v41  ;;  %2992 = vmatprep.mubr.msk.bf16.mxu0 %vm3450_vm0, %v3449_v0 }
 0x424   : > { %3002 = vmatprep.subr.bf16.mxu0 %v3449_v0 }
 0x429   : > { %1160 = vrot.lane.b32.xlu0 %v3838_v45, %s3455_s17  ;;  %s4235_s17 = sld [smem:[#allocation31_spill]] }
 0x42c   : > { %1163 = vrot.lane.b32.xlu1 %v3838_v45, %s3457_s1  ;;  %s2435_s1 = sshll.u32 %s844_s26, 4  ;;  %s2436_s1 = int_to_ptr.vmem [resolvable:$true] %s2435_s1 }
 0x42d   : > { %s3320_s18 = scalar_lea.vmem %s2436_s1, 128 }
 0x42e   : > { %p3321_p0 = scmp.ne.s32.totalorder %s2436_s1, %s3320_s18 }
 0x467   : > { %v1626_v42 = vpop.xlane.xlu1 %1625 }
 0x468   : > { %3214 = vrcp.f32 %v1626_v42 }
 0x46b   : > { %v1629_v43 = vpop.xlane.xlu0 %1628  ;;  %v1158_v55 = vpop.permute.xlu1 %1157 }
 0x46c   : > { %3216 = vrcp.f32 %v1629_v43  ;;  %v1171_v1 = vpack.c.bf16 %v1158_v55, %v1158_v55 }
 0x46e   : > { %v1922_v12 = vsel %vm1690_vm3, %v1171_v1, 0 }
 0x46f   : > { %v1155_v48 = vpop.permute.xlu0 %1154 }
 0x470   : > { %v1170_v53 = vpack.c.bf16 %v1155_v48, %v1155_v48 }
 0x472   : > { %v3215_v44 = vpop.eup %3214  ;;  %v1876_v54 = vsel %vm1690_vm3, %v1170_v53, 0  ;;  %v3182_v53 = vld [vmem:[%s4172_s7 + $0x10] sm:$0xff]  }
 0x473   : > { %v1654_v47 = vmul.f32 %v3215_v44, %v3905_v5 }
 0x475   : > { %v1680_v49 = vpack.c.bf16 %v1654_v47, %v1654_v47  ;;  %v1662_v60 = vsel %vm1183_vm2, %v1654_v47, 0.0 }
 0x476   : > { %v3217_v50 = vpop.eup %3216  ;;  %v1663_v5 = vadd.f32 %v1662_v60, %v1661_v62 }
 0x477   : > { %v1655_v52 = vmul.f32 %v3217_v50, %v3909_v4  ;;  %2987 = vmatmul.mubr.msk.bf16.vlgmr.msra.gmra.mrb[24].mxu1 %vm1183_vm2, %v1680_v49 }
 0x478   : > { %2997 = vmatpush3.bf16.msra.mxu1 %v1830_v51  ;;  %2998 = vmatprep.mubr.msk.bf16.mxu1 %vm3450_vm0, %v3449_v0  ;;  %v3180_v51 = vld [vmem:[%s4172_s7] sm:$0xff]  }
 0x479   : > { %v1681_v45 = vpack.c.bf16 %v1655_v52, %v1655_v52  ;;  %3008 = vmatprep.subr.bf16.mxu1 %v3449_v0  ;;  %v1664_v63 = vsel %vm1183_vm2, %v1655_v52, 0.0  ;;  %v3181_v52 = vld [vmem:[%s4172_s7 + $0x8] sm:$0xff]  }
 0x47a   : > { %v1665_v10 = vadd.f32 %v1664_v63, %v1663_v5 }
 0x47b   : > { %2993 = vmatmul.mubr.msk.bf16.vlgmr.msra.gmra.mrb[20].mxu0 %vm1183_vm2, %v1681_v45 }
 0x47c   : > { %3003 = vmatpush3.bf16.msra.mxu0 %v1876_v54  ;;  %3004 = vmatprep.mubr.msk.bf16.mxu0 %vm3450_vm0, %v3449_v0 }
 0x47d   : > { %3014 = vmatprep.subr.bf16.mxu0 %v3449_v0 }
 0x49c   : > { %v1632_v56 = vpop.xlane.xlu1 %1631 }
 0x49d   : > { %3218 = vrcp.f32 %v1632_v56 }
 0x4a0   : > { %v1635_v57 = vpop.xlane.xlu0 %1634  ;;  %v1638_v58 = vpop.xlane.xlu1 %1637 }
 0x4a1   : > { %3220 = vrcp.f32 %v1635_v57  ;;  %v3183_v57 = vld [vmem:[%s4172_s7 + $0x18] sm:$0xff]  }
 0x4a2   : > { %3222 = vrcp.f32 %v1638_v58 }
 0x4a4   : > { %v1641_v59 = vpop.xlane.xlu1 %1640  ;;  %v1161_v6 = vpop.permute.xlu0 %1160 }
 0x4a5   : > { %3224 = vrcp.f32 %v1641_v59  ;;  %v1172_v14 = vpack.c.bf16 %v1161_v6, %v1161_v6 }
 0x4a7   : > { %v3219_v61 = vpop.eup %3218  ;;  %v1968_v23 = vsel %vm1690_vm3, %v1172_v14, 0 }
 0x4a8   : > { %v1656_v2 = vmul.f32 %v3219_v61, %v3918_v24  ;;  %v1644_v3 = vpop.xlane.xlu1 %1643 }
 0x4a9   : > { %3226 = vrcp.f32 %v1644_v3 }
 0x4aa   : > { %v1666_v4 = vsel %vm1183_vm2, %v1656_v2, 0.0  ;;  %v1682_v8 = vpack.c.bf16 %v1656_v2, %v1656_v2 }
 0x4ab   : > { %v3221_v9 = vpop.eup %3220  ;;  %v1667_v15 = vadd.f32 %v1666_v4, %v1665_v10 }
 0x4ac   : > { %v3223_v11 = vpop.eup %3222  ;;  %v1657_v13 = vmul.f32 %v3221_v9, %v3920_v25  ;;  %2999 = vmatmul.mubr.msk.bf16.vlgmr.msra.gmra.mrb[28].mxu1 %vm1183_vm2, %v1682_v8  ;;  %v1164_v17 = vpop.permute.xlu1 %1163 }
 0x4ad   : > { %v1658_v16 = vmul.f32 %v3223_v11, %v3924_v28  ;;  %3009 = vmatpush3.bf16.msra.mxu1 %v1922_v12  ;;  %3010 = vmatprep.mubr.msk.bf16.mxu1 %vm3450_vm0, %v3449_v0  ;;  %v1173_v25 = vpack.c.bf16 %v1164_v17, %v1164_v17 }
 0x4ae   : > { %v1668_v18 = vsel %vm1183_vm2, %v1657_v13, 0.0  ;;  %v1683_v19 = vpack.c.bf16 %v1657_v13, %v1657_v13  ;;  %3020 = vmatprep.subr.bf16.mxu1 %v3449_v0 }
 0x4af   : > { %v3225_v20 = vpop.eup %3224  ;;  %v1669_v21 = vadd.f32 %v1668_v18, %v1667_v15  ;;  %v1670_v22 = vsel %vm1183_vm2, %v1658_v16, 0.0  ;;  %v1684_v28 = vpack.c.bf16 %v1658_v16, %v1658_v16  ;;  %v2014_v31 = vsel %vm1690_vm3, %v1173_v25, 0 }
 0x4b0   : > { %v1659_v24 = vmul.f32 %v3225_v20, %v3930_v32  ;;  %3005 = vmatmul.mubr.msk.bf16.vlgmr.msra.gmra.mrb[24].mxu0 %vm1183_vm2, %v1683_v19 }
 0x4b1   : > { %v1671_v26 = vadd.f32 %v1670_v22, %v1669_v21  ;;  %3015 = vmatpush3.bf16.msra.mxu0 %v1968_v23  ;;  %3016 = vmatprep.mubr.msk.bf16.mxu0 %vm3450_vm0, %v3449_v0 }
 0x4b2   : > { %v1672_v27 = vsel %vm1183_vm2, %v1659_v24, 0.0  ;;  %3026 = vmatprep.subr.bf16.mxu0 %v3449_v0  ;;  %v1685_v35 = vpack.c.bf16 %v1659_v24, %v1659_v24 }
 0x4b3   : > { %v3227_v29 = vpop.eup %3226  ;;  %v1673_v32 = vadd.f32 %v1672_v27, %v1671_v26  ;;  %v2814_v27 = vld [vmem:[%s4173_s8] ss:$0 sm:$0xff] }
 0x4b4   : > { %v1660_v30 = vmul.f32 %v3227_v29, %v3934_v34  ;;  %3011 = vmatmul.mubr.msk.bf16.vlgmr.msra.gmra.mrb[32].mxu1 %vm1183_vm2, %v1684_v28 }
 0x4b5   : > { %3021 = vmatpush3.bf16.msra.mxu1 %v2014_v31  ;;  %3022 = vmatprep.mubr.msk.bf16.mxu1 %vm3450_vm0, %v3449_v0 }
 0x4b6   : > { %v1674_v33 = vsel %vm1183_vm2, %v1660_v30, 0.0  ;;  %3038 = vmatprep.subr.bf16.mxu1 %v3449_v0  ;;  %v1686_v37 = vpack.c.bf16 %v1660_v30, %v1660_v30 }
 0x4b7   : > { %v1675_v36 = vadd.f32 %v1674_v33, %v1673_v32 }
 0x4b8   : > { %3017 = vmatmul.mubr.msk.bf16.vlgmr.msra.gmra.mrb[28].mxu0 %vm1183_vm2, %v1685_v35 }
 0x4b9   : > { %3034 = vmatprep.mubr.msk.bf16.mxu0 %vm3450_vm0, %v3449_v0  ;;  %v1677_v34 = vmul.f32 0.125, %v1675_v36  ;;  %3027 = vmatpush3.bf16.msra.mxu0 %v3180_v51 }
 0x4ba   : > { %3028 = vmatprep.subr.bf16.mxu0 %v3449_v0 }
 0x4bb   : > { %1678 = vst.msk [vmem:[%s844_s26] sm:$0xff] %vm1183_vm2, %v1677_v34 }
 0x4bc   : > { %3023 = vmatmul.mubr.msk.bf16.vlgmr.msra.gmra.mrb[36].mxu1 %vm1183_vm2, %v1686_v37 }
 0x4bd   : > { %3046 = vmatprep.mubr.msk.bf16.mxu1 %vm3450_vm0, %v3449_v0  ;;  %3029 = vmatpush3.bf16.msra.mxu0 %v3181_v52 }
 0x4be   : > { %3030 = vmatprep.subr.bf16.mxu0 %v3449_v0 }
 0x4c1   : > { %3031 = vmatpush3.bf16.msra.mxu0 %v3182_v53 }
 0x4c2   : > { %3032 = vmatprep.subr.bf16.mxu0 %v3449_v0 }
 0x4c5   : > { %3033 = vmatpush3.bf16.msra.mxu0 %v3183_v57 }
 0x4c6   : > { %3050 = vmatprep.subr.bf16.mxu0 %v3449_v0 }
 0x4f5   : > { %v3997_v38 = vpop.f32.mrb[16].mxu0 }
 0x4f6   : > { %v2982_v39 = vpop.f32.mrb[17].mxu0 }
 0x4f7   : > { %v1731_v40 = vpop.f32.mrb[18].mxu0 }
 0x4f8   : > { %v2983_v41 = vpop.f32.mrb[19].mxu0  ;;  %v3184_v40 = vld [vmem:[#allocation8] sm:$0xff]  }
 0x4f9   : > { %3039 = vmatpush3.bf16.msra.mxu1 %v3184_v40  ;;  %v3185_v41 = vld [vmem:[#allocation8 + $0x8] sm:$0xff]  }
 0x4fa   : > { %3040 = vmatprep.subr.bf16.mxu1 %v3449_v0 }
 0x4fd   : > { %3041 = vmatpush3.bf16.msra.mxu1 %v3185_v41 }
 0x4fe   : > { %3042 = vmatprep.subr.bf16.mxu1 %v3449_v0 }
 0x54a   : > { %v1774_v42 = vpop.f32.mrb[24].mxu1 }
 0x54b   : > { %2057 = vrot.lane.b32.xlu0 %v1774_v42, %s3459_s22  ;;  %v2988_v43 = vpop.f32.mrb[25].mxu1  ;;  %v3186_v42 = vld [vmem:[#allocation8 + $0x10] sm:$0xff]  }
 0x54c   : > { %v1777_v44 = vpop.f32.mrb[26].mxu1  ;;  %3043 = vmatpush3.bf16.msra.mxu1 %v3186_v42  ;;  %v3188_v43 = vld [vmem:[%s4176_s11] sm:$0xff]  }
 0x54d   : > { %v2989_v46 = vpop.f32.mrb[27].mxu1  ;;  %3044 = vmatprep.subr.bf16.mxu1 %v3449_v0  ;;  %v3189_v44 = vld [vmem:[%s4176_s11 + $0x8] sm:$0xff]  }
 0x54e   : > { %v1820_v47 = vpop.f32.mrb[20].mxu0  ;;  %v3190_v46 = vld [vmem:[%s4176_s11 + $0x10] sm:$0xff]  }
 0x54f   : > { %2061 = vrot.lane.b32.xlu1 %v1820_v47, %s3460_s0  ;;  %v2994_v48 = vpop.f32.mrb[21].mxu0  ;;  %v3191_v47 = vld [vmem:[%s4176_s11 + $0x18] sm:$0xff]   ;;  %s4239_s0 = sld [smem:[#allocation35_spill]] }
 0x550   : > { %v1823_v49 = vpop.f32.mrb[22].mxu0  ;;  %v3192_v48 = vld [vmem:[%s4176_s11 + $0x20] sm:$0xff]  }
 0x551   : > { %v2995_v50 = vpop.f32.mrb[23].mxu0  ;;  %v3193_v49 = vld [vmem:[%s4176_s11 + $0x28] sm:$0xff]  }
 0x57f   : > { %v1866_v45 = vpop.f32.mrb[28].mxu1 }
 0x580   : > { %2065 = vrot.lane.b32.xlu0 %v1866_v45, %s3461_s12  ;;  %v3000_v54 = vpop.f32.mrb[29].mxu1  ;;  %v2820_v45 = vld [vmem:[%s4234_s24] ss:$0 sm:$0xff]  ;;  %s3324_s12 = sshll.u32 %s3466_s13, 4  ;;  %s3325_s12 = int_to_ptr.vmem [resolvable:$false] %s3324_s12 }
 0x581   : > { %v1869_v55 = vpop.f32.mrb[30].mxu1  ;;  %p3327_p2 = scmp.lt.s32.totalorder %s2436_s1, %s3325_s12 }
 0x582   : > { %v3001_v56 = vpop.f32.mrb[31].mxu1  ;;  %v2821_v55 = vld [vmem:[%s4235_s17] ss:$0 sm:$0xff]  ;;  %s4240_s17 = smov %s4239_s0 }
 0x583   : > { %v1912_v58 = vpop.f32.mrb[24].mxu0 }
 0x584   : > { %2069 = vrot.lane.b32.xlu1 %v1912_v58, %s3462_s23  ;;  %v3006_v59 = vpop.f32.mrb[25].mxu0 }
 0x585   : > { %v1915_v60 = vpop.f32.mrb[26].mxu0  ;;  %v3194_v59 = vld [vmem:[%s4176_s11 + $0x30] sm:$0xff]  }
 0x586   : > { %v3007_v61 = vpop.f32.mrb[27].mxu0  ;;  %v3195_v60 = vld [vmem:[%s4176_s11 + $0x38] sm:$0xff]  }
 0x587   : > { %v1958_v62 = vpop.f32.mrb[32].mxu1  ;;  %v2822_v61 = vld [vmem:[%s4236_s29] ss:$0 sm:$0xff]  ;;  %s3326_s29 = scalar_lea.vmem %s3325_s12, 256 }
 0x588   : > { %2073 = vrot.lane.b32.xlu0 %v1958_v62, %s3463_s20  ;;  %v3012_v63 = vpop.f32.mrb[33].mxu1  ;;  %s4237_s20 = sld [smem:[#allocation29_spill]]  ;;  %p3328_p7 = scmp.lt.s32.totalorder %s3326_s29, %s3320_s18 }
 0x589   : > { %v1961_v1 = vpop.f32.mrb[34].mxu1 }
 0x58a   : > { %v3013_v2 = vpop.f32.mrb[35].mxu1  ;;  %p3329_p4 = por %p3328_p7, %p3327_p2 }
 0x58b   : > { %v2004_v3 = vpop.f32.mrb[28].mxu0 }
 0x58c   : > { %2077 = vrot.lane.b32.xlu1 %v2004_v3, %s3464_s25  ;;  %v3018_v5 = vpop.f32.mrb[29].mxu0  ;;  %s4238_s25 = sld [smem:[#allocation22_spill]] }
 0x58d   : > { %v2007_v6 = vpop.f32.mrb[30].mxu0 }
 0x58e   : > { %v3019_v4 = vpop.f32.mrb[31].mxu0 }
 0x58f   : > { %v2050_v8 = vpop.f32.mrb[36].mxu1 }
 0x590   : > { %2081 = vrot.lane.b32.xlu0 %v2050_v8, %s3465_s10  ;;  %v3024_v9 = vpop.f32.mrb[37].mxu1  ;;  %s2841_s10 = sshll.u32 %s3434_s30, 7 }
 0x591   : > { %v2053_v10 = vpop.f32.mrb[38].mxu1  ;;  %s4081_s21 = scalar_lea.hbm %s4239_s0, %s2841_s10 }
 0x592   : > { %v3025_v11 = vpop.f32.mrb[39].mxu1  ;;  %p4241_p5 = scmp.ne.s32.totalorder %s4238_s25, 0 }
 0x594   : > { %p3322_p9 = pnand %p3321_p0, %p4241_p5 }
 0x596   : > { %p3323_p1 = pneg %p3322_p9 }
 0x598   : > { %p3330_p8 = pnand %p3329_p4, %p3323_p1 }
 0x5bd   : > { %v2058_v12 = vpop.permute.xlu0 %2057 }
 0x5be   : > { %v2084_v16 = vsel %vm1183_vm2, %v3997_v38, %v2058_v12 }
 0x5c1   : > { %v2062_v13 = vpop.permute.xlu1 %2061 }
 0x5c2   : > { %v2086_v17 = vsel %vm2085_vm4, %v2084_v16, %v2062_v13 }
 0x5f2   : > { %v2066_v14 = vpop.permute.xlu0 %2065 }
 0x5f3   : > { %v2088_v19 = vsel %vm2087_vm5, %v2086_v17, %v2066_v14 }
 0x5f6   : > { %v2070_v15 = vpop.permute.xlu1 %2069 }
 0x5f7   : > { %v2090_v21 = vsel %vm2089_vm6, %v2088_v19, %v2070_v15 }
 0x5fa   : > { %v2074_v18 = vpop.permute.xlu0 %2073 }
 0x5fb   : > { %v2092_v22 = vsel %vm2091_vm7, %v2090_v21, %v2074_v18 }
 0x5fe   : > { %v2078_v20 = vpop.permute.xlu1 %2077 }
 0x5ff   : > { %v2094_v23 = vsel %vm2093_vm8, %v2092_v22, %v2078_v20 }
 0x602   : > { %v2082_v24 = vpop.permute.xlu0 %2081 }
 0x603   : > { %v2096_v25 = vsel %vm2095_vm9, %v2094_v23, %v2082_v24 }
 0x604   : > { %v2097_v26 = vpack.c.bf16 %v2096_v25, %v2096_v25 }
 0x606   : > { %3035 = vmatmul.mubr.msk.bf16.vlgmr.msra.gmra.mrb[32].mxu0 %vm901_vm1, %v2097_v26 }
 0x607   : > { %3066 = vmatprep.mubr.msk.bf16.mxu0 %vm3450_vm0, %v3449_v0  ;;  %3051 = vmatpush3.bf16.msra.mxu0 %v3188_v43 }
 0x608   : > { %3052 = vmatprep.subr.bf16.mxu0 %v3449_v0 }
 0x60b   : > { %3053 = vmatpush3.bf16.msra.mxu0 %v3189_v44 }
 0x60c   : > { %3054 = vmatprep.subr.bf16.mxu0 %v3449_v0 }
 0x60f   : > { %3055 = vmatpush3.bf16.msra.mxu0 %v3190_v46 }
 0x610   : > { %3056 = vmatprep.subr.bf16.mxu0 %v3449_v0 }
 0x613   : > { %3057 = vmatpush3.bf16.msra.mxu0 %v3191_v47 }
 0x614   : > { %3058 = vmatprep.subr.bf16.mxu0 %v3449_v0 }
 0x617   : > { %3059 = vmatpush3.bf16.msra.mxu0 %v3192_v48 }
 0x618   : > { %3060 = vmatprep.subr.bf16.mxu0 %v3449_v0 }
 0x61b   : > { %3061 = vmatpush3.bf16.msra.mxu0 %v3193_v49 }
 0x61c   : > { %3062 = vmatprep.subr.bf16.mxu0 %v3449_v0 }
 0x61f   : > { %3063 = vmatpush3.bf16.msra.mxu0 %v3194_v59 }
 0x620   : > { %3064 = vmatprep.subr.bf16.mxu0 %v3449_v0  ;;  %v2836_v0 = vld [vmem:[%s4237_s20] ss:$0 sm:$0xff] }
 0x623   : > { %3065 = vmatpush3.bf16.msra.mxu0 %v3195_v60 }
 0x6d9   : > { %v2165_v28 = vpop.f32.mrb[32].mxu0 }
 0x6da   : > { %v2166_v29 = vadd.f32 %v2814_v27, %v2165_v28  ;;  %v3036_v30 = vpop.f32.mrb[33].mxu0 }
 0x6db   : > { %v2168_v31 = vpop.f32.mrb[34].mxu0 }
 0x6dc   : > { %v3037_v32 = vpop.f32.mrb[35].mxu0  ;;  %v2171_v33 = vadd.f32 %v2166_v29, %v3781_v7  ;;  %v3187_v7 = vld [vmem:[#allocation8 + $0x18] sm:$0xff]  }
 0x6dd   : > { %3045 = vmatpush3.bf16.msra.mxu1 %v3187_v7 }
 0x6de   : > { %v2172_v35 = vsel %vm901_vm1, %v2171_v33, 0.0 }
 0x6df   : > { %2173 = vadd.xlane.f32.xlu1 %v2172_v35 }
 0x76c   : > { %v2174_v36 = vpop.xlane.xlu1 %2173 }
 0x76d   : > { %v2176_v34 = vmul.f32 0.015625, %v2174_v36 }
 0x76f   : > { %v2177_v37 = vsub.f32 %v2171_v33, %v2176_v34 }
 0x771   : > { %v2178_v38 = vmul.f32 %v2177_v37, %v2177_v37 }
 0x773   : > { %v2179_v39 = vsel %vm901_vm1, %v2178_v38, 0.0 }
 0x774   : > { %2180 = vadd.xlane.f32.xlu0 %v2179_v39 }
 0x801   : > { %v2181_v50 = vpop.xlane.xlu0 %2180 }
 0x802   : > { %v2182_v51 = vmul.f32 0.015625, %v2181_v50 }
 0x804   : > { %v2183_v52 = vadd.f32 1e-05, %v2182_v51 }
 0x806   : > { %3228 = vrsqrt.f32 %v2183_v52 }
 0x810   : > { %v3229_v53 = vpop.eup %3228 }
 0x811   : > { %v2185_v54 = vmul.f32 %v3229_v53, %v2177_v37 }
 0x813   : > { %v2192_v56 = vmul.f32 %v2820_v45, %v2185_v54 }
 0x815   : > { %v2199_v57 = vadd.f32 %v2821_v55, %v2192_v56 }
 0x817   : > { %v2200_v58 = vpack.c.bf16 %v2199_v57, %v2199_v57 }
 0x819   : > { %3047 = vmatmul.mubr.msk.bf16.vlgmr.msra.gmra.mrb[40].mxu1 %vm901_vm1, %v2200_v58 }
 0x8ec   : > { %v2268_v62 = vpop.f32.mrb[40].mxu1 }
 0x8ed   : > { %v2269_v63 = vadd.f32 %v2822_v61, %v2268_v62  ;;  %v3048_v1 = vpop.f32.mrb[41].mxu1 }
 0x8ee   : > { %v2271_v2 = vpop.f32.mrb[42].mxu1 }
 0x8ef   : > { %v2274_v3 = vmax.f32 %v2269_v63, 0.0  ;;  %v3049_v5 = vpop.f32.mrb[43].mxu1 }
 0x8f1   : > { %v2275_v6 = vpack.c.bf16 %v2274_v3, %v2274_v3 }
 0x8f3   : > { %3067 = vmatmul.mubr.bf16.vlgmr.msra.gmra.mrb[36].mxu0 %v2275_v6 }
 0x9c6   : > { %v2358_v4 = vpop.f32.mrb[36].mxu0 }
 0x9c7   : > { %v2364_v8 = vadd.f32 %v2358_v4, %v2199_v57  ;;  %v3068_v9 = vpop.f32.mrb[37].mxu0 }
 0x9c8   : > { %v2361_v10 = vpop.f32.mrb[38].mxu0 }
 0x9c9   : > { %v3069_v11 = vpop.f32.mrb[39].mxu0  ;;  %v2371_v12 = vadd.f32 %v2836_v0, %v2364_v8 }
 0x9cb   : > { %v2372_v13 = vsel %vm901_vm1, %v2371_v12, 0.0 }
 0x9cc   : > { %2373 = vadd.xlane.f32.xlu0 %v2372_v13 }
 0xa59   : > { %v2374_v14 = vpop.xlane.xlu0 %2373 }
 0xa5a   : > { %v2375_v15 = vmul.f32 0.015625, %v2374_v14 }
 0xa5c   : > { %v2376_v16 = vsub.f32 %v2371_v12, %v2375_v15 }
 0xa5e   : > { %v2377_v17 = vmul.f32 %v2376_v16, %v2376_v16 }
 0xa60   : > { %v2378_v18 = vsel %vm901_vm1, %v2377_v17, 0.0 }
 0xa61   : > { %2379 = vadd.xlane.f32.xlu1 %v2378_v18 }
 0xa62   : > { %3333 = shalt.err (!%p3330_p8)
}
 0xa63   : > { %s3334_s26 = scalar_lea.hbm %s4081_s21, 128  ;;  %s3338_s20 = scalar_lea.hbm %s4240_s17, 384 }
 0xa64   : > { %p3335_p10 = scmp.ne.s32.totalorder %s4081_s21, %s3334_s26  ;;  %p3339_p13 = scmp.lt.u32.totalorder %s4081_s21, %s4240_s17 }
 0xa65   : > { %p3340_p3 = scmp.lt.u32.totalorder %s3338_s20, %s3334_s26  ;;  %p3342_p0 = scmp.lt.u32.totalorder %s3334_s26, %s4081_s21 }
 0xa66   : > { %p3336_p6 = pnand %p3335_p10, %p4241_p5 }
 0xa67   : > { %p3341_p12 = por %p3340_p3, %p3339_p13 }
 0xa68   : > { %p3337_p11 = pneg %p3336_p6 }
 0xa69   : > { %p3343_p9 = por %p3342_p0, %p3341_p12 }
 0xa6b   : > { %p3344_p1 = pnand %p3343_p9, %p3337_p11 }
 0xa6d   : > { %3347 = shalt.err (!%p3344_p1)
}
 0xa6e   : > { %3079 = dma.vmem_to_hbm [thread:$0]  (%p4241_p5), %s2436_s1, 128, %s4081_s21, %s2407_s15  }
 0xa6f   : > { %s4242_s13 = sld [smem:[#allocation32_spill]]  ;;  %s4243_s26 = sld [smem:[#allocation33_spill]] }
 0xa70   : > { %s837_s2 = scalar_lea.vmem [#allocation9], %s3741_s14  ;;  %s4244_s15 = sld [smem:[#allocation34_spill]] }
 0xa71   : > { %s2420_s23 = sshll.u32 %s837_s2, 4  ;;  %s2402_s24 = scalar_lea.sflag [#allocation5], %s3738_s27  ;;  %s4117_s23 = int_to_ptr.vmem [resolvable:$true] %s2420_s23 }
 0xa72   : > { %s3348_s14 = scalar_lea.vmem %s4117_s23, 128  ;;  %s3467_s30 = smov [#allocation9]  }
 0xa73   : > { %p3349_p2 = scmp.ne.s32.totalorder %s4117_s23, %s3348_s14  ;;  %s3352_s22 = sshll.u32 %s3467_s30, 4  ;;  %s3353_s22 = int_to_ptr.vmem [resolvable:$false] %s3352_s22 }
 0xa74   : > { %p3355_p8 = scmp.lt.s32.totalorder %s4117_s23, %s3353_s22 }
 0xa75   : > { %v2837_v23 = vld [vmem:[%s4242_s13] ss:$0 sm:$0xff]  ;;  %p3350_p7 = pnand %p3349_p2, %p4241_p5 }
 0xa76   : > { %v2838_v25 = vld [vmem:[%s4243_s26] ss:$0 sm:$0xff]  ;;  %s4115_s20 = scalar_lea.hbm %s4244_s15, %s2841_s10  ;;  %s3354_s10 = scalar_lea.vmem %s3353_s22, 256 }
 0xa77   : > { %p3351_p4 = pneg %p3350_p7  ;;  %p3356_p10 = scmp.lt.s32.totalorder %s3354_s10, %s3348_s14 }
 0xa79   : > { %p3357_p6 = por %p3356_p10, %p3355_p8 }
 0xa7b   : > { %p3358_p11 = pnand %p3357_p6, %p3351_p4 }
 0xaee   : > { %v2380_v19 = vpop.xlane.xlu1 %2379 }
 0xaef   : > { %v2381_v20 = vmul.f32 0.015625, %v2380_v19 }
 0xaf1   : > { %v2382_v21 = vadd.f32 1e-05, %v2381_v20 }
 0xaf3   : > { %3230 = vrsqrt.f32 %v2382_v21 }
 0xafd   : > { %v3231_v22 = vpop.eup %3230 }
 0xafe   : > { %v2384_v24 = vmul.f32 %v3231_v22, %v2376_v16 }
 0xb00   : > { %v2391_v26 = vmul.f32 %v2837_v23, %v2384_v24 }
 0xb02   : > { %v2398_v27 = vadd.f32 %v2838_v25, %v2391_v26 }
 0xb04   : > { %2399 = vst.msk [vmem:[#allocation2] sm:$0xff] %vm901_vm1, %v2398_v27  ;;  %2400 = vst.msk [vmem:[%s837_s2] sm:$0xff] %vm901_vm1, %v2398_v27 }
 0xb05   : > { %3361 = shalt.err (!%p3358_p11)
}
 0xb06   : > { %s3362_s27 = scalar_lea.hbm %s4115_s20, 128  ;;  %s3366_s13 = scalar_lea.hbm %s4244_s15, 384 }
 0xb07   : > { %p3363_p13 = scmp.ne.s32.totalorder %s4115_s20, %s3362_s27  ;;  %p3367_p0 = scmp.lt.u32.totalorder %s4115_s20, %s4244_s15 }
 0xb08   : > { %p3368_p9 = scmp.lt.u32.totalorder %s3366_s13, %s3362_s27  ;;  %p3370_p2 = scmp.lt.u32.totalorder %s3362_s27, %s4115_s20 }
 0xb09   : > { %p3364_p3 = pnand %p3363_p13, %p4241_p5 }
 0xb0a   : > { %p3369_p1 = por %p3368_p9, %p3367_p0 }
 0xb0b   : > { %p3365_p12 = pneg %p3364_p3 }
 0xb0c   : > { %p3371_p7 = por %p3370_p2, %p3369_p1 }
 0xb0e   : > { %p3372_p4 = pnand %p3371_p7, %p3365_p12 }
 0xb10   : > { %3375 = shalt.err (!%p3372_p4)
}
 0xb11   : > { %3078 = dma.vmem_to_hbm [thread:$0]  (%p4241_p5), %s4117_s23, 128, %s4115_s20, %s2402_s24  }
 0xb12 PF: > { %s4245_s26 = sld [smem:[#allocation17_spill]]  ;;  %s4246_s2 = sld [smem:[#allocation20_spill]] }
 0xb13   : > { %p3103_p8 = scmp.ge.s32.totalorder %s3442_s19, 2 }
 0xb18   : > { %s2447_s21 = sand.u32 1, %s4245_s26   ;;  %p4247_p10 = scmp.ne.s32.totalorder %s4246_s2, 0 }
 0xb19   : > { %s2448_s1 = scalar_lea.sflag [#allocation5], %s2447_s21 }
 0xb1a   : > { %p3094_p6 = pnand %p3103_p8, %p4247_p10 }
 0xb1c   : > { %3413 = dma.done.wait (!%p3094_p6), %s2448_s1, 128  }
 0xb1d   : > { %3415 = vsyncadd (!%p3094_p6), %s2448_s1, 4294967168  ;;  %s2457_s14 = scalar_lea.sflag [#allocation11], %s2447_s21 }
 0xb1e   : > { %3417 = dma.done.wait (!%p3094_p6), %s2457_s14, 128  }
 0xb1f   : > { %3419 = vsyncadd (!%p3094_p6), %s2457_s14, 4294967168  ;;  %s41_s19 = sadd.s32 1, %s3442_s19   ;;  %s4248_s25 = sld [smem:[#allocation18_spill]] }
 0xb20   : > { %p38_p11 = scmp.ge.s32.totalorder %s41_s19, 5   ;;  %s4249_s29 = sld [smem:[#allocation23_spill]] }
 0xb21   : > { %s4250_s30 = sld [smem:[#allocation19_spill]]  ;;  %s4251_s0 = sld [smem:[#allocation21_spill]] }
 0xb22   : > { %s4252_s27 = smov %s3426_s28  ;;  %40 = sbr.rel (!%p38_p11) target bundleno = 23 (0x17), region = 214 }
 0xb25   : > { %s4253_s28 = smov %s4248_s25 }
 0xb29   :  { %2462 = vsyncpa [#allocation4], 1 }
 0xb2a   :  { %2464 = vsyncpa [#allocation4 + $0x1], 1 }
 0xb2b   :  { %2465 = vsyncpa [#allocation7], 1 }
 0xb2c   :  { %2467 = vsyncpa [#allocation7 + $0x1], 1 }
 0xb2d   :  { %2468 = vsyncpa [#allocation5], 1 }
 0xb2e   :  { %2470 = vsyncpa [#allocation5 + $0x1], 1 }
 0xb2f   :  { %2471 = vsyncpa [#allocation11], 1 }
 0xb30   :  { %2473 = vsyncpa [#allocation11 + $0x1], 1 }

</bundles_post_ra>
